<compile_context>
chip_gen: v6e
topology: v6e:2x2x1
jax: 0.10.0
libtpu: 0.0.40
codegen_flags: <defaults>
</compile_context>

<pallas_src>
import functools

import jax
import jax.numpy as jnp
from jax import lax
from jax.experimental import pallas as pl
from jax.experimental.pallas import tpu as pltpu


# ----------------------------------------------------------------------------
# Pallas kernel: fused concat + DoubleConv on one row tile
# ----------------------------------------------------------------------------
def _up_double_conv_kernel(colidx_ref, x2_ref, x1_ref, w1_ref, s1_ref, b1_ref,
                           w2_ref, s2_ref, b2_ref, o_ref, ywin, slab, *, W, th):
    # x2_ref / x1_ref : (C2, Lw) / (C1, Lw) per-tile windows, channels-first,
    #                   spatially flattened, Lw = (th+4)*W + 2 (zero row halo
    #                   from the wrapper + 1 guard lane at each end).
    # w1_ref : (Cout, 9*Ccat)   conv1 weights, K = tap-major, channel-minor
    # w2_ref : (Cout, 9*Cout)   conv2 weights
    # s*/b*  : (Cout, 1)        folded BN scale / bias (conv bias folded in, f32)
    # o_ref  : (Cout, th*W)     lane-dense output tile
    # ywin   : (Cout, (th+2)*W + 2) scratch: conv2 source window (y1 + guards)
    # slab   : (9*Cmax, (th+2)*W)   shared im2col slab (conv1 then conv2)
    C2 = x2_ref.shape[0]
    C1 = x1_ref.shape[0]
    Ccat = C1 + C2
    Cout = o_ref.shape[0]
    cdt = w1_ref.dtype                      # compute dtype (f32 or bf16)

    r = pl.program_id(1)
    R = pl.num_programs(1)
    L1 = (th + 2) * W                       # y1 tile width   (rows r*th-1 .. r*th+th)
    L2 = th * W                             # output tile width

    xcol = colidx_ref[...]                  # (1, L1) destination column index
    keep_m1 = xcol != 0                     # ox = -1 taps: column 0 is conv padding
    keep_p1 = xcol != (W - 1)               # ox = +1 taps: column W-1 is conv padding

    # ---- conv1 im2col slab: 9 static shifted slices per input ref; the
    #      torch.cat([x2, x1], 1) is fused by writing x2 rows and x1 rows into
    #      adjacent sublane bands.  No slab pre-zeroing: every lane the matmul
    #      reads is written here (row halos are zeros from the wrapper pad,
    #      column wrap handled by the inline masks, guard lanes only ever feed
    #      masked positions).
    for ky in range(3):
        for kx in range(3):
            oy, ox = ky - 1, kx - 1
            t = ky * 3 + kx
            lo = 1 + (1 + oy) * W + ox      # static source offset in the window
            a2 = x2_ref[:, lo:lo + L1]
            a1 = x1_ref[:, lo:lo + L1]
            if ox == -1:
                a2 = jnp.where(keep_m1, a2, 0)
                a1 = jnp.where(keep_m1, a1, 0)
            elif ox == 1:
                a2 = jnp.where(keep_p1, a2, 0)
                a1 = jnp.where(keep_p1, a1, 0)
            slab[t * Ccat:t * Ccat + C2, 0:L1] = a2
            slab[t * Ccat + C2:(t + 1) * Ccat, 0:L1] = a1

    # ---- conv1: one im2col matmul (K = 9*Ccat), folded BN + ReLU ----
    # NOTE: M = Cout underfills the MXU for small decoder stages; left as-is
    # because the slab build / store slot, not the MXU, is the binding unit.
    y1 = jnp.dot(w1_ref[...], slab[0:9 * Ccat, 0:L1],
                 preferred_element_type=jnp.float32)
    y1 = jnp.maximum(y1 * s1_ref[...] + b1_ref[...], 0.0)

    # y1 halo rows that fall outside the image are conv2's zero padding.
    lane = lax.broadcasted_iota(jnp.int32, (1, L1), 1)
    row_ok = jnp.logical_and(jnp.logical_or(r > 0, lane >= W),
                             jnp.logical_or(r < R - 1, lane < (th + 1) * W))
    # TODO(synk): Dropout is identity (eval mode).
    # BN + ReLU + mask + cast folded into the single store filling ywin.
    ywin[:, 1:1 + L1] = jnp.where(row_ok, y1, 0.0).astype(cdt)

    # ---- conv2 im2col slab (reuses the same slab scratch; the conv1 slab is
    #      dead once its matmul has been issued) ----
    for ky in range(3):
        for kx in range(3):
            oy, ox = ky - 1, kx - 1
            t = ky * 3 + kx
            lo = 1 + (1 + oy) * W + ox
            ay = ywin[:, lo:lo + L2]
            if ox == -1:
                ay = jnp.where(keep_m1[:, 0:L2], ay, 0)
            elif ox == 1:
                ay = jnp.where(keep_p1[:, 0:L2], ay, 0)
            slab[t * Cout:(t + 1) * Cout, 0:L2] = ay

    y2 = jnp.dot(w2_ref[...], slab[0:9 * Cout, 0:L2],
                 preferred_element_type=jnp.float32)
    y2 = jnp.maximum(y2 * s2_ref[...] + b2_ref[...], 0.0)
    o_ref[...] = y2.astype(o_ref.dtype)     # lane-dense (Cout, th*W) store


# ----------------------------------------------------------------------------
# Wrapper: row-tile sizing, window construction, pallas_call
# ----------------------------------------------------------------------------
def _choose_row_tile(H, W, Ccat, Cout, itemsize, budget_bytes=28 << 20):
    """Largest row tile dividing H with (th*W) % 128 == 0 (lane-dense output)
    whose estimated VMEM footprint fits the budget (per-generation sizing:
    pass a smaller budget for v7x's 64 MiB VMEM)."""
    cmax = max(Ccat, Cout)
    cands = [t for t in range(1, H + 1)
             if H % t == 0 and ((t * W) % 128 == 0 or t == H)]
    best = cands[0]
    for t in cands:
        L1 = (t + 2) * W
        need = (2 * Ccat * ((t + 4) * W + 2) * itemsize      # input windows (dbl buf)
                + 2 * Cout * t * W * itemsize                # output block (dbl buf)
                + (9 * cmax + Cout) * L1 * itemsize          # slab + ywin scratch
                + Cout * (L1 + t * W) * 4                    # f32 matmul results
                + 2 * 9 * (Ccat + Cout) * Cout * itemsize)   # weights (dbl buf)
        if need <= budget_bytes:
            best = t
    return best


def _make_row_windows(x, th):
    """(N, C, H, W) -> (N, R, C, (th+4)*W + 2): per-row-tile windows with a
    2-row zero halo (double 3x3 conv) and 1 zero guard lane at each end so the
    corner-tap shifted slices in the kernel stay in bounds."""
    N, C, H, W = x.shape
    R = H // th
    xp = jnp.pad(x, ((0, 0), (0, 0), (2, 2), (0, 0)))
    win = jnp.stack([xp[:, :, r * th:r * th + th + 4, :] for r in range(R)],
                    axis=1)                               # (N, R, C, th+4, W)
    win = win.reshape(N, R, C, (th + 4) * W)
    return jnp.pad(win, ((0, 0), (0, 0), (0, 0), (1, 1)))


def double_conv_pallas(x2w, x1w, params, *, H, W, th):
    """x2w: (N, R, C2, Lw), x1w: (N, R, C1, Lw) row-tile windows.
    Returns (N, Cout, H*W) in the activations' dtype (f32 or bf16)."""
    w1, s1, b1, w2, s2, b2 = params
    N, R, C2, Lw = x2w.shape
    C1 = x1w.shape[2]
    Ccat = C1 + C2
    Cout = w1.shape[0]
    Cmax = max(Ccat, Cout)
    cdt = x2w.dtype
    w1 = w1.astype(cdt)
    w2 = w2.astype(cdt)
    L1 = (th + 2) * W
    L2 = th * W

    # Destination-column index for the ox = +/-1 edge masks (built host-side so
    # no in-kernel modulo / reshape is needed).
    colidx = jnp.tile(jnp.arange(W, dtype=jnp.int32), th + 2).reshape(1, L1)

    # VMEM footprint estimate; raise the scoped limit only when needed
    # (defaults: 16 MiB v5e / 32 MiB v6e,v7x).
    isz = jnp.dtype(cdt).itemsize
    est = (2 * (C2 + C1) * Lw * isz
           + 2 * Cout * L2 * isz
           + 2 * (9 * Ccat + 9 * Cout + 4) * Cout * isz
           + (9 * Cmax + Cout) * L1 * isz + 2 * Cout * isz
           + Cout * (L1 + L2) * 4)
    vmem_limit = None if est <= (16 << 20) else int(min(est * 5 // 4, 56 << 20))

    kernel = functools.partial(_up_double_conv_kernel, W=W, th=th)
    grid_spec = pltpu.PrefetchScalarGridSpec(
        num_scalar_prefetch=0,
        grid=(N, R),
        in_specs=[
            pl.BlockSpec((1, L1), lambda n, r: (0, 0)),
            pl.BlockSpec((None, None, C2, Lw), lambda n, r: (n, r, 0, 0)),
            pl.BlockSpec((None, None, C1, Lw), lambda n, r: (n, r, 0, 0)),
            # TODO(synk): constant-index weight blocks are still double-buffered;
            # for deep stages single-buffer them (pipeline_mode) to reclaim VMEM.
            pl.BlockSpec((Cout, 9 * Ccat), lambda n, r: (0, 0)),
            pl.BlockSpec((Cout, 1), lambda n, r: (0, 0)),
            pl.BlockSpec((Cout, 1), lambda n, r: (0, 0)),
            pl.BlockSpec((Cout, 9 * Cout), lambda n, r: (0, 0)),
            pl.BlockSpec((Cout, 1), lambda n, r: (0, 0)),
            pl.BlockSpec((Cout, 1), lambda n, r: (0, 0)),
        ],
        out_specs=pl.BlockSpec((None, Cout, L2), lambda n, r: (n, 0, r)),
        scratch_shapes=[
            pltpu.VMEM((Cout, L1 + 2), cdt),      # ywin: y1 window + guard lanes
            pltpu.VMEM((9 * Cmax, L1), cdt),      # shared im2col slab
        ],
    )
    return pl.pallas_call(
        kernel,
        out_shape=jax.ShapeDtypeStruct((N, Cout, H * W), cdt),
        grid_spec=grid_spec,
        compiler_params=pltpu.CompilerParams(
            dimension_semantics=("parallel", "parallel"),
            vmem_limit_bytes=vmem_limit),
    )(colidx, x2w, x1w, w1, s1, b1, w2, s2, b2)


# ----------------------------------------------------------------------------
# JAX glue: bilinear upsample (align_corners=True), F.pad, windows
# ----------------------------------------------------------------------------
def bilinear_upsample_x2_align_corners(x):
    """x: (N, C, H, W) -> (N, C, 2H, 2W); matches nn.Upsample(scale_factor=2,
    mode='bilinear', align_corners=True)."""
    N, C, H, W = x.shape
    Ho, Wo = 2 * H, 2 * W

    def coords(n_in, n_out):
        if n_in == 1:
            z = jnp.zeros((n_out,), jnp.int32)
            return z, z, jnp.zeros((n_out,), jnp.float32)
        src = jnp.arange(n_out, dtype=jnp.float32) * (n_in - 1) / (n_out - 1)
        i0 = jnp.clip(jnp.floor(src).astype(jnp.int32), 0, n_in - 1)
        i1 = jnp.clip(i0 + 1, 0, n_in - 1)
        return i0, i1, src - i0.astype(jnp.float32)

    y0, y1, fy = coords(H, Ho)
    x0, x1, fx = coords(W, Wo)
    v00 = x[:, :, y0[:, None], x0[None, :]]
    v01 = x[:, :, y0[:, None], x1[None, :]]
    v10 = x[:, :, y1[:, None], x0[None, :]]
    v11 = x[:, :, y1[:, None], x1[None, :]]
    fy = fy[:, None]
    fx = fx[None, :]
    top = v00 * (1.0 - fx) + v01 * fx
    bot = v10 * (1.0 - fx) + v11 * fx
    return top * (1.0 - fy) + bot * fy


def up_forward(x1, x2, params, compute_dtype=jnp.bfloat16, row_tile=None):
    """Full Up.forward.  x1, x2: NCHW float32 (as in the PyTorch module)."""
    x1u = bilinear_upsample_x2_align_corners(x1)
    diffY = x2.shape[2] - x1u.shape[2]
    diffX = x2.shape[3] - x1u.shape[3]
    x1u = jnp.pad(x1u, ((0, 0), (0, 0),
                        (diffY // 2, diffY - diffY // 2),
                        (diffX // 2, diffX - diffX // 2)))
    N, C2, H, W = x2.shape
    C1 = x1u.shape[1]
    Cout = params[0].shape[0]
    if row_tile is None:
        row_tile = _choose_row_tile(H, W, C1 + C2, Cout,
                                    jnp.dtype(compute_dtype).itemsize)
    assert H % row_tile == 0, (H, row_tile)
    x2w = _make_row_windows(x2.astype(compute_dtype), row_tile)
    x1w = _make_row_windows(x1u.astype(compute_dtype), row_tile)
    y = double_conv_pallas(x2w, x1w, params, H=H, W=W, th=row_tile)
    return y.reshape(N, Cout, H, W)


# ----------------------------------------------------------------------------
# Deterministic parameter construction (folded conv-bias + BN) and reference
# ----------------------------------------------------------------------------
def make_params(key, cin, cout):
    ks = jax.random.split(key, 8)
    eps = 1e-5

    def conv_w(k, ci, co):
        w_hwio = jax.random.normal(k, (3, 3, ci, co), jnp.float32) * 0.1
        # kernel layout: (Cout, 9*Cin), K ordered (ky*3+kx)-major then ci
        w_k = jnp.transpose(w_hwio, (3, 0, 1, 2)).reshape(co, 9 * ci)
        return w_hwio, w_k

    def bn(kg, kb, km, kv, co):
        gamma = 1.0 + 0.05 * jax.random.normal(kg, (co,), jnp.float32)
        beta = 0.05 * jax.random.normal(kb, (co,), jnp.float32)
        mean = 0.05 * jax.random.normal(km, (co,), jnp.float32)
        var = jnp.abs(jax.random.normal(kv, (co,), jnp.float32)) * 0.1 + 1.0
        scale = gamma / jnp.sqrt(var + eps)
        return scale, beta - mean * scale

    w1_hwio, w1_k = conv_w(ks[0], cin, cout)
    cb1 = 0.02 * jax.random.normal(ks[1], (cout,), jnp.float32)
    s1, b1 = bn(ks[2], ks[3], ks[4], ks[5], cout)
    b1 = b1 + cb1 * s1                                   # fold conv1 bias into BN

    w2_hwio, w2_k = conv_w(ks[6], cout, cout)
    cb2 = 0.02 * jax.random.normal(ks[7], (cout,), jnp.float32)
    s2, b2 = bn(*jax.random.split(jax.random.fold_in(key, 99), 4), cout)
    b2 = b2 + cb2 * s2

    kernel_params = (w1_k, s1.reshape(-1, 1), b1.reshape(-1, 1),
                     w2_k, s2.reshape(-1, 1), b2.reshape(-1, 1))
    ref_params = (w1_hwio, s1, b1, w2_hwio, s2, b2)
    return kernel_params, ref_params


def double_conv_reference(x_nhwc, w1_hwio, s1, b1, w2_hwio, s2, b2):
    dn = ('NHWC', 'HWIO', 'NHWC')
    y = lax.conv_general_dilated(x_nhwc, w1_hwio, (1, 1), 'SAME',
                                 dimension_numbers=dn,
                                 precision=lax.Precision.HIGHEST)
    y = jnp.maximum(y * s1 + b1, 0.0)
    y = lax.conv_general_dilated(y, w2_hwio, (1, 1), 'SAME',
                                 dimension_numbers=dn,
                                 precision=lax.Precision.HIGHEST)
    return jnp.maximum(y * s2 + b2, 0.0)


# ----------------------------------------------------------------------------
if __name__ == "__main__":
    key = jax.random.PRNGKey(0)
    k1, k2, kp = jax.random.split(key, 3)

    # Up(in_channels=8, out_channels=4): x1 coarse features, x2 skip connection.
    N, C1, H1, W1 = 2, 4, 8, 8
    C2, H2, W2 = 4, 16, 16
    Cin, Cout = C1 + C2, 4

    x1 = jax.random.normal(k1, (N, C1, H1, W1), jnp.float32)
    x2 = jax.random.normal(k2, (N, C2, H2, W2), jnp.float32)
    kernel_params, ref_params = make_params(kp, Cin, Cout)

    # Reference path (shares the upsample glue with the kernel path).
    x1u = bilinear_upsample_x2_align_corners(x1)
    x_cat = jnp.concatenate([x2, x1u], axis=1)
    x_nhwc = jnp.transpose(x_cat, (0, 2, 3, 1))
    ref = jnp.transpose(double_conv_reference(x_nhwc, *ref_params), (0, 3, 1, 2))

    up_jit = jax.jit(up_forward, static_argnames=("compute_dtype", "row_tile"))

    # f32 path: row_tile=8 exercises the 2-tile halo logic, auto picks 1 tile.
    out_a = jax.block_until_ready(
        up_jit(x1, x2, kernel_params, compute_dtype=jnp.float32, row_tile=8))
    out_b = jax.block_until_ready(
        up_jit(x1, x2, kernel_params, compute_dtype=jnp.float32))
    assert out_a.shape == (N, Cout, H2, W2), out_a.shape
    err_a = float(jnp.max(jnp.abs(out_a - ref)))
    err_b = float(jnp.max(jnp.abs(out_b - ref)))
    assert err_a < 5e-4, err_a
    assert err_b < 5e-4, err_b

    # bf16 default path: bf16 activations/weights, f32 accumulation + BN/ReLU.
    out_c = jax.block_until_ready(up_jit(x1, x2, kernel_params, row_tile=8))
    err_c = float(jnp.max(jnp.abs(out_c.astype(jnp.float32) - ref)))
    assert err_c < 7e-2, err_c

    print("KERNEL_OK")
</pallas_src>

<mosaic_0001>
module attributes {stable_mosaic.version = 11 : i64} {
  func.func @_up_double_conv_kernel(%arg0: i32, %arg1: i32, %arg2: memref<1x160xi32, #tpu.memory_space<vmem>>, %arg3: memref<1x1x4x194xf32, #tpu.memory_space<vmem>>, %arg4: memref<1x1x4x194xf32, #tpu.memory_space<vmem>>, %arg5: memref<4x72xf32, #tpu.memory_space<vmem>>, %arg6: memref<4x1xf32, #tpu.memory_space<vmem>>, %arg7: memref<4x1xf32, #tpu.memory_space<vmem>>, %arg8: memref<4x36xf32, #tpu.memory_space<vmem>>, %arg9: memref<4x1xf32, #tpu.memory_space<vmem>>, %arg10: memref<4x1xf32, #tpu.memory_space<vmem>>, %arg11: memref<1x4x128xf32, #tpu.memory_space<vmem>>, %arg12: memref<4x162xf32, #tpu.memory_space<vmem>>, %arg13: memref<72x160xf32, #tpu.memory_space<vmem>>) attributes {dimension_semantics = [#tpu.dimension_semantics<parallel>, #tpu.dimension_semantics<parallel>], iteration_bounds = array<i64: 2, 2>, scalar_prefetch = 0 : i64, scratch_operands = 2 : i64, tpu.core_type = #tpu.core_type<tc>, window_params = [{pipeline_mode = #tpu.pipeline_mode<synchronous>, transform_indices = @transform_0, window_bounds = array<i64: 1, 160>}, {transform_indices = @transform_1, window_bounds = array<i64: 1, 1, 4, 194>}, {transform_indices = @transform_2, window_bounds = array<i64: 1, 1, 4, 194>}, {pipeline_mode = #tpu.pipeline_mode<synchronous>, transform_indices = @transform_3, window_bounds = array<i64: 4, 72>}, {pipeline_mode = #tpu.pipeline_mode<synchronous>, transform_indices = @transform_4, window_bounds = array<i64: 4, 1>}, {pipeline_mode = #tpu.pipeline_mode<synchronous>, transform_indices = @transform_5, window_bounds = array<i64: 4, 1>}, {pipeline_mode = #tpu.pipeline_mode<synchronous>, transform_indices = @transform_6, window_bounds = array<i64: 4, 36>}, {pipeline_mode = #tpu.pipeline_mode<synchronous>, transform_indices = @transform_7, window_bounds = array<i64: 4, 1>}, {pipeline_mode = #tpu.pipeline_mode<synchronous>, transform_indices = @transform_8, window_bounds = array<i64: 4, 1>}, {transform_indices = @transform_9, window_bounds = array<i64: 1, 4, 128>}]} {
    %c0 = arith.constant 0 : index
    %c0_0 = arith.constant 0 : index
    %0 = vector.load %arg2[%c0, %c0_0] : memref<1x160xi32, #tpu.memory_space<vmem>>, vector<1x160xi32>
    %c0_i32 = arith.constant 0 : i32
    %1 = vector.broadcast %c0_i32 : i32 to vector<1x160xi32>
    %2 = arith.cmpi ne, %0, %1 : vector<1x160xi32>
    %c15_i32 = arith.constant 15 : i32
    %3 = vector.broadcast %c15_i32 : i32 to vector<1x160xi32>
    %4 = arith.cmpi ne, %0, %3 : vector<1x160xi32>
    %c0_1 = arith.constant 0 : index
    %c0_2 = arith.constant 0 : index
    %c0_3 = arith.constant 0 : index
    %c0_4 = arith.constant 0 : index
    %5 = vector.load %arg3[%c0_1, %c0_2, %c0_3, %c0_4] : memref<1x1x4x194xf32, #tpu.memory_space<vmem>>, vector<1x1x4x160xf32>
    %6 = vector.shape_cast %5 : vector<1x1x4x160xf32> to vector<4x160xf32>
    %c0_5 = arith.constant 0 : index
    %c0_6 = arith.constant 0 : index
    %c0_7 = arith.constant 0 : index
    %c0_8 = arith.constant 0 : index
    %7 = vector.load %arg4[%c0_5, %c0_6, %c0_7, %c0_8] : memref<1x1x4x194xf32, #tpu.memory_space<vmem>>, vector<1x1x4x160xf32>
    %8 = vector.shape_cast %7 : vector<1x1x4x160xf32> to vector<4x160xf32>
    %c0_i32_9 = arith.constant 0 : i32
    %9 = arith.sitofp %c0_i32_9 : i32 to f32
    %10 = vector.shape_cast %2 : vector<1x160xi1> to vector<1x160xi1>
    %11 = vector.broadcast %10 : vector<1x160xi1> to vector<4x160xi1>
    %12 = vector.broadcast %9 : f32 to vector<4x160xf32>
    %13 = arith.select %11, %6, %12 : vector<4x160xi1>, vector<4x160xf32>
    %c0_i32_10 = arith.constant 0 : i32
    %14 = arith.sitofp %c0_i32_10 : i32 to f32
    %15 = vector.shape_cast %2 : vector<1x160xi1> to vector<1x160xi1>
    %16 = vector.broadcast %15 : vector<1x160xi1> to vector<4x160xi1>
    %17 = vector.broadcast %14 : f32 to vector<4x160xf32>
    %18 = arith.select %16, %8, %17 : vector<4x160xi1>, vector<4x160xf32>
    %c0_11 = arith.constant 0 : index
    %c0_12 = arith.constant 0 : index
    %19 = vector.load %arg13[%c0_11, %c0_12] : memref<72x160xf32, #tpu.memory_space<vmem>>, vector<4x160xf32>
    tpu.vector_store %arg13[%c0_11, %c0_12], %13 {strides = array<i32>} : memref<72x160xf32, #tpu.memory_space<vmem>>, vector<4x160xf32>,
    %c4 = arith.constant 4 : index
    %c0_13 = arith.constant 0 : index
    %20 = vector.load %arg13[%c4, %c0_13] : memref<72x160xf32, #tpu.memory_space<vmem>>, vector<4x160xf32>
    tpu.vector_store %arg13[%c4, %c0_13], %18 {strides = array<i32>} : memref<72x160xf32, #tpu.memory_space<vmem>>, vector<4x160xf32>,
    %c0_14 = arith.constant 0 : index
    %c0_15 = arith.constant 0 : index
    %c0_16 = arith.constant 0 : index
    %c1 = arith.constant 1 : index
    %21 = vector.load %arg3[%c0_14, %c0_15, %c0_16, %c1] : memref<1x1x4x194xf32, #tpu.memory_space<vmem>>, vector<1x1x4x160xf32>
    %22 = vector.shape_cast %21 : vector<1x1x4x160xf32> to vector<4x160xf32>
    %c0_17 = arith.constant 0 : index
    %c0_18 = arith.constant 0 : index
    %c0_19 = arith.constant 0 : index
    %c1_20 = arith.constant 1 : index
    %23 = vector.load %arg4[%c0_17, %c0_18, %c0_19, %c1_20] : memref<1x1x4x194xf32, #tpu.memory_space<vmem>>, vector<1x1x4x160xf32>
    %24 = vector.shape_cast %23 : vector<1x1x4x160xf32> to vector<4x160xf32>
    %c8 = arith.constant 8 : index
    %c0_21 = arith.constant 0 : index
    %25 = vector.load %arg13[%c8, %c0_21] : memref<72x160xf32, #tpu.memory_space<vmem>>, vector<4x160xf32>
    tpu.vector_store %arg13[%c8, %c0_21], %22 {strides = array<i32>} : memref<72x160xf32, #tpu.memory_space<vmem>>, vector<4x160xf32>,
    %c12 = arith.constant 12 : index
    %c0_22 = arith.constant 0 : index
    %26 = vector.load %arg13[%c12, %c0_22] : memref<72x160xf32, #tpu.memory_space<vmem>>, vector<4x160xf32>
    tpu.vector_store %arg13[%c12, %c0_22], %24 {strides = array<i32>} : memref<72x160xf32, #tpu.memory_space<vmem>>, vector<4x160xf32>,
    %c0_23 = arith.constant 0 : index
    %c0_24 = arith.constant 0 : index
    %c0_25 = arith.constant 0 : index
    %c2 = arith.constant 2 : index
    %27 = vector.load %arg3[%c0_23, %c0_24, %c0_25, %c2] : memref<1x1x4x194xf32, #tpu.memory_space<vmem>>, vector<1x1x4x160xf32>
    %28 = vector.shape_cast %27 : vector<1x1x4x160xf32> to vector<4x160xf32>
    %c0_26 = arith.constant 0 : index
    %c0_27 = arith.constant 0 : index
    %c0_28 = arith.constant 0 : index
    %c2_29 = arith.constant 2 : index
    %29 = vector.load %arg4[%c0_26, %c0_27, %c0_28, %c2_29] : memref<1x1x4x194xf32, #tpu.memory_space<vmem>>, vector<1x1x4x160xf32>
    %30 = vector.shape_cast %29 : vector<1x1x4x160xf32> to vector<4x160xf32>
    %c0_i32_30 = arith.constant 0 : i32
    %31 = arith.sitofp %c0_i32_30 : i32 to f32
    %32 = vector.shape_cast %4 : vector<1x160xi1> to vector<1x160xi1>
    %33 = vector.broadcast %32 : vector<1x160xi1> to vector<4x160xi1>
    %34 = vector.broadcast %31 : f32 to vector<4x160xf32>
    %35 = arith.select %33, %28, %34 : vector<4x160xi1>, vector<4x160xf32>
    %c0_i32_31 = arith.constant 0 : i32
    %36 = arith.sitofp %c0_i32_31 : i32 to f32
    %37 = vector.shape_cast %4 : vector<1x160xi1> to vector<1x160xi1>
    %38 = vector.broadcast %37 : vector<1x160xi1> to vector<4x160xi1>
    %39 = vector.broadcast %36 : f32 to vector<4x160xf32>
    %40 = arith.select %38, %30, %39 : vector<4x160xi1>, vector<4x160xf32>
    %c16 = arith.constant 16 : index
    %c0_32 = arith.constant 0 : index
    %41 = vector.load %arg13[%c16, %c0_32] : memref<72x160xf32, #tpu.memory_space<vmem>>, vector<4x160xf32>
    tpu.vector_store %arg13[%c16, %c0_32], %35 {strides = array<i32>} : memref<72x160xf32, #tpu.memory_space<vmem>>, vector<4x160xf32>,
    %c20 = arith.constant 20 : index
    %c0_33 = arith.constant 0 : index
    %42 = vector.load %arg13[%c20, %c0_33] : memref<72x160xf32, #tpu.memory_space<vmem>>, vector<4x160xf32>
    tpu.vector_store %arg13[%c20, %c0_33], %40 {strides = array<i32>} : memref<72x160xf32, #tpu.memory_space<vmem>>, vector<4x160xf32>,
    %c0_34 = arith.constant 0 : index
    %c0_35 = arith.constant 0 : index
    %c0_36 = arith.constant 0 : index
    %c16_37 = arith.constant 16 : index
    %43 = vector.load %arg3[%c0_34, %c0_35, %c0_36, %c16_37] : memref<1x1x4x194xf32, #tpu.memory_space<vmem>>, vector<1x1x4x160xf32>
    %44 = vector.shape_cast %43 : vector<1x1x4x160xf32> to vector<4x160xf32>
    %c0_38 = arith.constant 0 : index
    %c0_39 = arith.constant 0 : index
    %c0_40 = arith.constant 0 : index
    %c16_41 = arith.constant 16 : index
    %45 = vector.load %arg4[%c0_38, %c0_39, %c0_40, %c16_41] : memref<1x1x4x194xf32, #tpu.memory_space<vmem>>, vector<1x1x4x160xf32>
    %46 = vector.shape_cast %45 : vector<1x1x4x160xf32> to vector<4x160xf32>
    %c0_i32_42 = arith.constant 0 : i32
    %47 = arith.sitofp %c0_i32_42 : i32 to f32
    %48 = vector.shape_cast %2 : vector<1x160xi1> to vector<1x160xi1>
    %49 = vector.broadcast %48 : vector<1x160xi1> to vector<4x160xi1>
    %50 = vector.broadcast %47 : f32 to vector<4x160xf32>
    %51 = arith.select %49, %44, %50 : vector<4x160xi1>, vector<4x160xf32>
    %c0_i32_43 = arith.constant 0 : i32
    %52 = arith.sitofp %c0_i32_43 : i32 to f32
    %53 = vector.shape_cast %2 : vector<1x160xi1> to vector<1x160xi1>
    %54 = vector.broadcast %53 : vector<1x160xi1> to vector<4x160xi1>
    %55 = vector.broadcast %52 : f32 to vector<4x160xf32>
    %56 = arith.select %54, %46, %55 : vector<4x160xi1>, vector<4x160xf32>
    %c24 = arith.constant 24 : index
    %c0_44 = arith.constant 0 : index
    %57 = vector.load %arg13[%c24, %c0_44] : memref<72x160xf32, #tpu.memory_space<vmem>>, vector<4x160xf32>
    tpu.vector_store %arg13[%c24, %c0_44], %51 {strides = array<i32>} : memref<72x160xf32, #tpu.memory_space<vmem>>, vector<4x160xf32>,
    %c28 = arith.constant 28 : index
    %c0_45 = arith.constant 0 : index
    %58 = vector.load %arg13[%c28, %c0_45] : memref<72x160xf32, #tpu.memory_space<vmem>>, vector<4x160xf32>
    tpu.vector_store %arg13[%c28, %c0_45], %56 {strides = array<i32>} : memref<72x160xf32, #tpu.memory_space<vmem>>, vector<4x160xf32>,
    %c0_46 = arith.constant 0 : index
    %c0_47 = arith.constant 0 : index
    %c0_48 = arith.constant 0 : index
    %c17 = arith.constant 17 : index
    %59 = vector.load %arg3[%c0_46, %c0_47, %c0_48, %c17] : memref<1x1x4x194xf32, #tpu.memory_space<vmem>>, vector<1x1x4x160xf32>
    %60 = vector.shape_cast %59 : vector<1x1x4x160xf32> to vector<4x160xf32>
    %c0_49 = arith.constant 0 : index
    %c0_50 = arith.constant 0 : index
    %c0_51 = arith.constant 0 : index
    %c17_52 = arith.constant 17 : index
    %61 = vector.load %arg4[%c0_49, %c0_50, %c0_51, %c17_52] : memref<1x1x4x194xf32, #tpu.memory_space<vmem>>, vector<1x1x4x160xf32>
    %62 = vector.shape_cast %61 : vector<1x1x4x160xf32> to vector<4x160xf32>
    %c32 = arith.constant 32 : index
    %c0_53 = arith.constant 0 : index
    %63 = vector.load %arg13[%c32, %c0_53] : memref<72x160xf32, #tpu.memory_space<vmem>>, vector<4x160xf32>
    tpu.vector_store %arg13[%c32, %c0_53], %60 {strides = array<i32>} : memref<72x160xf32, #tpu.memory_space<vmem>>, vector<4x160xf32>,
    %c36 = arith.constant 36 : index
    %c0_54 = arith.constant 0 : index
    %64 = vector.load %arg13[%c36, %c0_54] : memref<72x160xf32, #tpu.memory_space<vmem>>, vector<4x160xf32>
    tpu.vector_store %arg13[%c36, %c0_54], %62 {strides = array<i32>} : memref<72x160xf32, #tpu.memory_space<vmem>>, vector<4x160xf32>,
    %c0_55 = arith.constant 0 : index
    %c0_56 = arith.constant 0 : index
    %c0_57 = arith.constant 0 : index
    %c18 = arith.constant 18 : index
    %65 = vector.load %arg3[%c0_55, %c0_56, %c0_57, %c18] : memref<1x1x4x194xf32, #tpu.memory_space<vmem>>, vector<1x1x4x160xf32>
    %66 = vector.shape_cast %65 : vector<1x1x4x160xf32> to vector<4x160xf32>
    %c0_58 = arith.constant 0 : index
    %c0_59 = arith.constant 0 : index
    %c0_60 = arith.constant 0 : index
    %c18_61 = arith.constant 18 : index
    %67 = vector.load %arg4[%c0_58, %c0_59, %c0_60, %c18_61] : memref<1x1x4x194xf32, #tpu.memory_space<vmem>>, vector<1x1x4x160xf32>
    %68 = vector.shape_cast %67 : vector<1x1x4x160xf32> to vector<4x160xf32>
    %c0_i32_62 = arith.constant 0 : i32
    %69 = arith.sitofp %c0_i32_62 : i32 to f32
    %70 = vector.shape_cast %4 : vector<1x160xi1> to vector<1x160xi1>
    %71 = vector.broadcast %70 : vector<1x160xi1> to vector<4x160xi1>
    %72 = vector.broadcast %69 : f32 to vector<4x160xf32>
    %73 = arith.select %71, %66, %72 : vector<4x160xi1>, vector<4x160xf32>
    %c0_i32_63 = arith.constant 0 : i32
    %74 = arith.sitofp %c0_i32_63 : i32 to f32
    %75 = vector.shape_cast %4 : vector<1x160xi1> to vector<1x160xi1>
    %76 = vector.broadcast %75 : vector<1x160xi1> to vector<4x160xi1>
    %77 = vector.broadcast %74 : f32 to vector<4x160xf32>
    %78 = arith.select %76, %68, %77 : vector<4x160xi1>, vector<4x160xf32>
    %c40 = arith.constant 40 : index
    %c0_64 = arith.constant 0 : index
    %79 = vector.load %arg13[%c40, %c0_64] : memref<72x160xf32, #tpu.memory_space<vmem>>, vector<4x160xf32>
    tpu.vector_store %arg13[%c40, %c0_64], %73 {strides = array<i32>} : memref<72x160xf32, #tpu.memory_space<vmem>>, vector<4x160xf32>,
    %c44 = arith.constant 44 : index
    %c0_65 = arith.constant 0 : index
    %80 = vector.load %arg13[%c44, %c0_65] : memref<72x160xf32, #tpu.memory_space<vmem>>, vector<4x160xf32>
    tpu.vector_store %arg13[%c44, %c0_65], %78 {strides = array<i32>} : memref<72x160xf32, #tpu.memory_space<vmem>>, vector<4x160xf32>,
    %c0_66 = arith.constant 0 : index
    %c0_67 = arith.constant 0 : index
    %c0_68 = arith.constant 0 : index
    %c32_69 = arith.constant 32 : index
    %81 = vector.load %arg3[%c0_66, %c0_67, %c0_68, %c32_69] : memref<1x1x4x194xf32, #tpu.memory_space<vmem>>, vector<1x1x4x160xf32>
    %82 = vector.shape_cast %81 : vector<1x1x4x160xf32> to vector<4x160xf32>
    %c0_70 = arith.constant 0 : index
    %c0_71 = arith.constant 0 : index
    %c0_72 = arith.constant 0 : index
    %c32_73 = arith.constant 32 : index
    %83 = vector.load %arg4[%c0_70, %c0_71, %c0_72, %c32_73] : memref<1x1x4x194xf32, #tpu.memory_space<vmem>>, vector<1x1x4x160xf32>
    %84 = vector.shape_cast %83 : vector<1x1x4x160xf32> to vector<4x160xf32>
    %c0_i32_74 = arith.constant 0 : i32
    %85 = arith.sitofp %c0_i32_74 : i32 to f32
    %86 = vector.shape_cast %2 : vector<1x160xi1> to vector<1x160xi1>
    %87 = vector.broadcast %86 : vector<1x160xi1> to vector<4x160xi1>
    %88 = vector.broadcast %85 : f32 to vector<4x160xf32>
    %89 = arith.select %87, %82, %88 : vector<4x160xi1>, vector<4x160xf32>
    %c0_i32_75 = arith.constant 0 : i32
    %90 = arith.sitofp %c0_i32_75 : i32 to f32
    %91 = vector.shape_cast %2 : vector<1x160xi1> to vector<1x160xi1>
    %92 = vector.broadcast %91 : vector<1x160xi1> to vector<4x160xi1>
    %93 = vector.broadcast %90 : f32 to vector<4x160xf32>
    %94 = arith.select %92, %84, %93 : vector<4x160xi1>, vector<4x160xf32>
    %c48 = arith.constant 48 : index
    %c0_76 = arith.constant 0 : index
    %95 = vector.load %arg13[%c48, %c0_76] : memref<72x160xf32, #tpu.memory_space<vmem>>, vector<4x160xf32>
    tpu.vector_store %arg13[%c48, %c0_76], %89 {strides = array<i32>} : memref<72x160xf32, #tpu.memory_space<vmem>>, vector<4x160xf32>,
    %c52 = arith.constant 52 : index
    %c0_77 = arith.constant 0 : index
    %96 = vector.load %arg13[%c52, %c0_77] : memref<72x160xf32, #tpu.memory_space<vmem>>, vector<4x160xf32>
    tpu.vector_store %arg13[%c52, %c0_77], %94 {strides = array<i32>} : memref<72x160xf32, #tpu.memory_space<vmem>>, vector<4x160xf32>,
    %c0_78 = arith.constant 0 : index
    %c0_79 = arith.constant 0 : index
    %c0_80 = arith.constant 0 : index
    %c33 = arith.constant 33 : index
    %97 = vector.load %arg3[%c0_78, %c0_79, %c0_80, %c33] : memref<1x1x4x194xf32, #tpu.memory_space<vmem>>, vector<1x1x4x160xf32>
    %98 = vector.shape_cast %97 : vector<1x1x4x160xf32> to vector<4x160xf32>
    %c0_81 = arith.constant 0 : index
    %c0_82 = arith.constant 0 : index
    %c0_83 = arith.constant 0 : index
    %c33_84 = arith.constant 33 : index
    %99 = vector.load %arg4[%c0_81, %c0_82, %c0_83, %c33_84] : memref<1x1x4x194xf32, #tpu.memory_space<vmem>>, vector<1x1x4x160xf32>
    %100 = vector.shape_cast %99 : vector<1x1x4x160xf32> to vector<4x160xf32>
    %c56 = arith.constant 56 : index
    %c0_85 = arith.constant 0 : index
    %101 = vector.load %arg13[%c56, %c0_85] : memref<72x160xf32, #tpu.memory_space<vmem>>, vector<4x160xf32>
    tpu.vector_store %arg13[%c56, %c0_85], %98 {strides = array<i32>} : memref<72x160xf32, #tpu.memory_space<vmem>>, vector<4x160xf32>,
    %c60 = arith.constant 60 : index
    %c0_86 = arith.constant 0 : index
    %102 = vector.load %arg13[%c60, %c0_86] : memref<72x160xf32, #tpu.memory_space<vmem>>, vector<4x160xf32>
    tpu.vector_store %arg13[%c60, %c0_86], %100 {strides = array<i32>} : memref<72x160xf32, #tpu.memory_space<vmem>>, vector<4x160xf32>,
    %c0_87 = arith.constant 0 : index
    %c0_88 = arith.constant 0 : index
    %c0_89 = arith.constant 0 : index
    %c34 = arith.constant 34 : index
    %103 = vector.load %arg3[%c0_87, %c0_88, %c0_89, %c34] : memref<1x1x4x194xf32, #tpu.memory_space<vmem>>, vector<1x1x4x160xf32>
    %104 = vector.shape_cast %103 : vector<1x1x4x160xf32> to vector<4x160xf32>
    %c0_90 = arith.constant 0 : index
    %c0_91 = arith.constant 0 : index
    %c0_92 = arith.constant 0 : index
    %c34_93 = arith.constant 34 : index
    %105 = vector.load %arg4[%c0_90, %c0_91, %c0_92, %c34_93] : memref<1x1x4x194xf32, #tpu.memory_space<vmem>>, vector<1x1x4x160xf32>
    %106 = vector.shape_cast %105 : vector<1x1x4x160xf32> to vector<4x160xf32>
    %c0_i32_94 = arith.constant 0 : i32
    %107 = arith.sitofp %c0_i32_94 : i32 to f32
    %108 = vector.shape_cast %4 : vector<1x160xi1> to vector<1x160xi1>
    %109 = vector.broadcast %108 : vector<1x160xi1> to vector<4x160xi1>
    %110 = vector.broadcast %107 : f32 to vector<4x160xf32>
    %111 = arith.select %109, %104, %110 : vector<4x160xi1>, vector<4x160xf32>
    %c0_i32_95 = arith.constant 0 : i32
    %112 = arith.sitofp %c0_i32_95 : i32 to f32
    %113 = vector.shape_cast %4 : vector<1x160xi1> to vector<1x160xi1>
    %114 = vector.broadcast %113 : vector<1x160xi1> to vector<4x160xi1>
    %115 = vector.broadcast %112 : f32 to vector<4x160xf32>
    %116 = arith.select %114, %106, %115 : vector<4x160xi1>, vector<4x160xf32>
    %c64 = arith.constant 64 : index
    %c0_96 = arith.constant 0 : index
    %117 = vector.load %arg13[%c64, %c0_96] : memref<72x160xf32, #tpu.memory_space<vmem>>, vector<4x160xf32>
    tpu.vector_store %arg13[%c64, %c0_96], %111 {strides = array<i32>} : memref<72x160xf32, #tpu.memory_space<vmem>>, vector<4x160xf32>,
    %c68 = arith.constant 68 : index
    %c0_97 = arith.constant 0 : index
    %118 = vector.load %arg13[%c68, %c0_97] : memref<72x160xf32, #tpu.memory_space<vmem>>, vector<4x160xf32>
    tpu.vector_store %arg13[%c68, %c0_97], %116 {strides = array<i32>} : memref<72x160xf32, #tpu.memory_space<vmem>>, vector<4x160xf32>,
    %c0_98 = arith.constant 0 : index
    %c0_99 = arith.constant 0 : index
    %119 = vector.load %arg5[%c0_98, %c0_99] : memref<4x72xf32, #tpu.memory_space<vmem>>, vector<4x72xf32>
    %c0_100 = arith.constant 0 : index
    %c0_101 = arith.constant 0 : index
    %120 = vector.load %arg13[%c0_100, %c0_101] : memref<72x160xf32, #tpu.memory_space<vmem>>, vector<72x160xf32>
    %cst = arith.constant dense<0.000000e+00> : vector<4x160xf32>
    %121 = tpu.matmul %119, %120, %cst {dimension_numbers = #tpu.dot_dimension_numbers<[1], [0], [0], [1], [0, 0, 1, 1], [], []>} : vector<4x72xf32>, vector<72x160xf32>, vector<4x160xf32> -> vector<4x160xf32>
    %c0_102 = arith.constant 0 : index
    %c0_103 = arith.constant 0 : index
    %122 = vector.load %arg6[%c0_102, %c0_103] : memref<4x1xf32, #tpu.memory_space<vmem>>, vector<4x1xf32>
    %123 = vector.broadcast %122 : vector<4x1xf32> to vector<4x160xf32>
    %124 = arith.mulf %121, %123 : vector<4x160xf32>
    %c0_104 = arith.constant 0 : index
    %c0_105 = arith.constant 0 : index
    %125 = vector.load %arg7[%c0_104, %c0_105] : memref<4x1xf32, #tpu.memory_space<vmem>>, vector<4x1xf32>
    %126 = vector.broadcast %125 : vector<4x1xf32> to vector<4x160xf32>
    %127 = arith.addf %124, %126 : vector<4x160xf32>
    %cst_106 = arith.constant 0.000000e+00 : f32
    %128 = vector.broadcast %cst_106 : f32 to vector<4x160xf32>
    %129 = arith.maximumf %127, %128 : vector<4x160xf32>
    %130 = tpu.iota {dimensions = array<i32: 1>} : vector<1x160xi32>
    %c0_i32_107 = arith.constant 0 : i32
    %131 = arith.cmpi sgt, %arg1, %c0_i32_107 : i32
    %c16_i32 = arith.constant 16 : i32
    %132 = vector.broadcast %c16_i32 : i32 to vector<1x160xi32>
    %133 = arith.cmpi sge, %130, %132 : vector<1x160xi32>
    %134 = vector.broadcast %131 : i1 to vector<1x160xi1>
    %135 = arith.ori %134, %133 : vector<1x160xi1>
    %c1_i32 = arith.constant 1 : i32
    %136 = arith.cmpi slt, %arg1, %c1_i32 : i32
    %c144_i32 = arith.constant 144 : i32
    %137 = vector.broadcast %c144_i32 : i32 to vector<1x160xi32>
    %138 = arith.cmpi slt, %130, %137 : vector<1x160xi32>
    %139 = vector.broadcast %136 : i1 to vector<1x160xi1>
    %140 = arith.ori %139, %138 : vector<1x160xi1>
    %141 = arith.andi %135, %140 : vector<1x160xi1>
    %cst_108 = arith.constant 0.000000e+00 : f32
    %142 = vector.shape_cast %141 : vector<1x160xi1> to vector<1x160xi1>
    %143 = vector.broadcast %142 : vector<1x160xi1> to vector<4x160xi1>
    %144 = vector.broadcast %cst_108 : f32 to vector<4x160xf32>
    %145 = arith.select %143, %129, %144 : vector<4x160xi1>, vector<4x160xf32>
    %c0_109 = arith.constant 0 : index
    %c1_110 = arith.constant 1 : index
    %146 = vector.load %arg12[%c0_109, %c1_110] : memref<4x162xf32, #tpu.memory_space<vmem>>, vector<4x160xf32>
    tpu.vector_store %arg12[%c0_109, %c1_110], %145 {strides = array<i32>} : memref<4x162xf32, #tpu.memory_space<vmem>>, vector<4x160xf32>,
    %c0_111 = arith.constant 0 : index
    %c0_112 = arith.constant 0 : index
    %147 = vector.load %arg12[%c0_111, %c0_112] : memref<4x162xf32, #tpu.memory_space<vmem>>, vector<4x128xf32>
    %148 = vector.extract_strided_slice %2 {offsets = [0, 0], sizes = [1, 128], strides = [1, 1]} : vector<1x160xi1> to vector<1x128xi1>
    %c0_i32_113 = arith.constant 0 : i32
    %149 = arith.sitofp %c0_i32_113 : i32 to f32
    %150 = vector.shape_cast %148 : vector<1x128xi1> to vector<1x128xi1>
    %151 = vector.broadcast %150 : vector<1x128xi1> to vector<4x128xi1>
    %152 = vector.broadcast %149 : f32 to vector<4x128xf32>
    %153 = arith.select %151, %147, %152 : vector<4x128xi1>, vector<4x128xf32>
    %c0_114 = arith.constant 0 : index
    %c0_115 = arith.constant 0 : index
    %154 = vector.load %arg13[%c0_114, %c0_115] : memref<72x160xf32, #tpu.memory_space<vmem>>, vector<4x128xf32>
    tpu.vector_store %arg13[%c0_114, %c0_115], %153 {strides = array<i32>} : memref<72x160xf32, #tpu.memory_space<vmem>>, vector<4x128xf32>,
    %c0_116 = arith.constant 0 : index
    %c1_117 = arith.constant 1 : index
    %155 = vector.load %arg12[%c0_116, %c1_117] : memref<4x162xf32, #tpu.memory_space<vmem>>, vector<4x128xf32>
    %c4_118 = arith.constant 4 : index
    %c0_119 = arith.constant 0 : index
    %156 = vector.load %arg13[%c4_118, %c0_119] : memref<72x160xf32, #tpu.memory_space<vmem>>, vector<4x128xf32>
    tpu.vector_store %arg13[%c4_118, %c0_119], %155 {strides = array<i32>} : memref<72x160xf32, #tpu.memory_space<vmem>>, vector<4x128xf32>,
    %c0_120 = arith.constant 0 : index
    %c2_121 = arith.constant 2 : index
    %157 = vector.load %arg12[%c0_120, %c2_121] : memref<4x162xf32, #tpu.memory_space<vmem>>, vector<4x128xf32>
    %158 = vector.extract_strided_slice %4 {offsets = [0, 0], sizes = [1, 128], strides = [1, 1]} : vector<1x160xi1> to vector<1x128xi1>
    %c0_i32_122 = arith.constant 0 : i32
    %159 = arith.sitofp %c0_i32_122 : i32 to f32
    %160 = vector.shape_cast %158 : vector<1x128xi1> to vector<1x128xi1>
    %161 = vector.broadcast %160 : vector<1x128xi1> to vector<4x128xi1>
    %162 = vector.broadcast %159 : f32 to vector<4x128xf32>
    %163 = arith.select %161, %157, %162 : vector<4x128xi1>, vector<4x128xf32>
    %c8_123 = arith.constant 8 : index
    %c0_124 = arith.constant 0 : index
    %164 = vector.load %arg13[%c8_123, %c0_124] : memref<72x160xf32, #tpu.memory_space<vmem>>, vector<4x128xf32>
    tpu.vector_store %arg13[%c8_123, %c0_124], %163 {strides = array<i32>} : memref<72x160xf32, #tpu.memory_space<vmem>>, vector<4x128xf32>,
    %c0_125 = arith.constant 0 : index
    %c16_126 = arith.constant 16 : index
    %165 = vector.load %arg12[%c0_125, %c16_126] : memref<4x162xf32, #tpu.memory_space<vmem>>, vector<4x128xf32>
    %166 = vector.extract_strided_slice %2 {offsets = [0, 0], sizes = [1, 128], strides = [1, 1]} : vector<1x160xi1> to vector<1x128xi1>
    %c0_i32_127 = arith.constant 0 : i32
    %167 = arith.sitofp %c0_i32_127 : i32 to f32
    %168 = vector.shape_cast %166 : vector<1x128xi1> to vector<1x128xi1>
    %169 = vector.broadcast %168 : vector<1x128xi1> to vector<4x128xi1>
    %170 = vector.broadcast %167 : f32 to vector<4x128xf32>
    %171 = arith.select %169, %165, %170 : vector<4x128xi1>, vector<4x128xf32>
    %c12_128 = arith.constant 12 : index
    %c0_129 = arith.constant 0 : index
    %172 = vector.load %arg13[%c12_128, %c0_129] : memref<72x160xf32, #tpu.memory_space<vmem>>, vector<4x128xf32>
    tpu.vector_store %arg13[%c12_128, %c0_129], %171 {strides = array<i32>} : memref<72x160xf32, #tpu.memory_space<vmem>>, vector<4x128xf32>,
    %c0_130 = arith.constant 0 : index
    %c17_131 = arith.constant 17 : index
    %173 = vector.load %arg12[%c0_130, %c17_131] : memref<4x162xf32, #tpu.memory_space<vmem>>, vector<4x128xf32>
    %c16_132 = arith.constant 16 : index
    %c0_133 = arith.constant 0 : index
    %174 = vector.load %arg13[%c16_132, %c0_133] : memref<72x160xf32, #tpu.memory_space<vmem>>, vector<4x128xf32>
    tpu.vector_store %arg13[%c16_132, %c0_133], %173 {strides = array<i32>} : memref<72x160xf32, #tpu.memory_space<vmem>>, vector<4x128xf32>,
    %c0_134 = arith.constant 0 : index
    %c18_135 = arith.constant 18 : index
    %175 = vector.load %arg12[%c0_134, %c18_135] : memref<4x162xf32, #tpu.memory_space<vmem>>, vector<4x128xf32>
    %176 = vector.extract_strided_slice %4 {offsets = [0, 0], sizes = [1, 128], strides = [1, 1]} : vector<1x160xi1> to vector<1x128xi1>
    %c0_i32_136 = arith.constant 0 : i32
    %177 = arith.sitofp %c0_i32_136 : i32 to f32
    %178 = vector.shape_cast %176 : vector<1x128xi1> to vector<1x128xi1>
    %179 = vector.broadcast %178 : vector<1x128xi1> to vector<4x128xi1>
    %180 = vector.broadcast %177 : f32 to vector<4x128xf32>
    %181 = arith.select %179, %175, %180 : vector<4x128xi1>, vector<4x128xf32>
    %c20_137 = arith.constant 20 : index
    %c0_138 = arith.constant 0 : index
    %182 = vector.load %arg13[%c20_137, %c0_138] : memref<72x160xf32, #tpu.memory_space<vmem>>, vector<4x128xf32>
    tpu.vector_store %arg13[%c20_137, %c0_138], %181 {strides = array<i32>} : memref<72x160xf32, #tpu.memory_space<vmem>>, vector<4x128xf32>,
    %c0_139 = arith.constant 0 : index
    %c32_140 = arith.constant 32 : index
    %183 = vector.load %arg12[%c0_139, %c32_140] : memref<4x162xf32, #tpu.memory_space<vmem>>, vector<4x128xf32>
    %184 = vector.extract_strided_slice %2 {offsets = [0, 0], sizes = [1, 128], strides = [1, 1]} : vector<1x160xi1> to vector<1x128xi1>
    %c0_i32_141 = arith.constant 0 : i32
    %185 = arith.sitofp %c0_i32_141 : i32 to f32
    %186 = vector.shape_cast %184 : vector<1x128xi1> to vector<1x128xi1>
    %187 = vector.broadcast %186 : vector<1x128xi1> to vector<4x128xi1>
    %188 = vector.broadcast %185 : f32 to vector<4x128xf32>
    %189 = arith.select %187, %183, %188 : vector<4x128xi1>, vector<4x128xf32>
    %c24_142 = arith.constant 24 : index
    %c0_143 = arith.constant 0 : index
    %190 = vector.load %arg13[%c24_142, %c0_143] : memref<72x160xf32, #tpu.memory_space<vmem>>, vector<4x128xf32>
    tpu.vector_store %arg13[%c24_142, %c0_143], %189 {strides = array<i32>} : memref<72x160xf32, #tpu.memory_space<vmem>>, vector<4x128xf32>,
    %c0_144 = arith.constant 0 : index
    %c33_145 = arith.constant 33 : index
    %191 = vector.load %arg12[%c0_144, %c33_145] : memref<4x162xf32, #tpu.memory_space<vmem>>, vector<4x128xf32>
    %c28_146 = arith.constant 28 : index
    %c0_147 = arith.constant 0 : index
    %192 = vector.load %arg13[%c28_146, %c0_147] : memref<72x160xf32, #tpu.memory_space<vmem>>, vector<4x128xf32>
    tpu.vector_store %arg13[%c28_146, %c0_147], %191 {strides = array<i32>} : memref<72x160xf32, #tpu.memory_space<vmem>>, vector<4x128xf32>,
    %c0_148 = arith.constant 0 : index
    %c34_149 = arith.constant 34 : index
    %193 = vector.load %arg12[%c0_148, %c34_149] : memref<4x162xf32, #tpu.memory_space<vmem>>, vector<4x128xf32>
    %194 = vector.extract_strided_slice %4 {offsets = [0, 0], sizes = [1, 128], strides = [1, 1]} : vector<1x160xi1> to vector<1x128xi1>
    %c0_i32_150 = arith.constant 0 : i32
    %195 = arith.sitofp %c0_i32_150 : i32 to f32
    %196 = vector.shape_cast %194 : vector<1x128xi1> to vector<1x128xi1>
    %197 = vector.broadcast %196 : vector<1x128xi1> to vector<4x128xi1>
    %198 = vector.broadcast %195 : f32 to vector<4x128xf32>
    %199 = arith.select %197, %193, %198 : vector<4x128xi1>, vector<4x128xf32>
    %c32_151 = arith.constant 32 : index
    %c0_152 = arith.constant 0 : index
    %200 = vector.load %arg13[%c32_151, %c0_152] : memref<72x160xf32, #tpu.memory_space<vmem>>, vector<4x128xf32>
    tpu.vector_store %arg13[%c32_151, %c0_152], %199 {strides = array<i32>} : memref<72x160xf32, #tpu.memory_space<vmem>>, vector<4x128xf32>,
    %c0_153 = arith.constant 0 : index
    %c0_154 = arith.constant 0 : index
    %201 = vector.load %arg8[%c0_153, %c0_154] : memref<4x36xf32, #tpu.memory_space<vmem>>, vector<4x36xf32>
    %c0_155 = arith.constant 0 : index
    %c0_156 = arith.constant 0 : index
    %202 = vector.load %arg13[%c0_155, %c0_156] : memref<72x160xf32, #tpu.memory_space<vmem>>, vector<36x128xf32>
    %cst_157 = arith.constant dense<0.000000e+00> : vector<4x128xf32>
    %203 = tpu.matmul %201, %202, %cst_157 {dimension_numbers = #tpu.dot_dimension_numbers<[1], [0], [0], [1], [0, 0, 1, 1], [], []>} : vector<4x36xf32>, vector<36x128xf32>, vector<4x128xf32> -> vector<4x128xf32>
    %c0_158 = arith.constant 0 : index
    %c0_159 = arith.constant 0 : index
    %204 = vector.load %arg9[%c0_158, %c0_159] : memref<4x1xf32, #tpu.memory_space<vmem>>, vector<4x1xf32>
    %205 = vector.broadcast %204 : vector<4x1xf32> to vector<4x128xf32>
    %206 = arith.mulf %203, %205 : vector<4x128xf32>
    %c0_160 = arith.constant 0 : index
    %c0_161 = arith.constant 0 : index
    %207 = vector.load %arg10[%c0_160, %c0_161] : memref<4x1xf32, #tpu.memory_space<vmem>>, vector<4x1xf32>
    %208 = vector.broadcast %207 : vector<4x1xf32> to vector<4x128xf32>
    %209 = arith.addf %206, %208 : vector<4x128xf32>
    %cst_162 = arith.constant 0.000000e+00 : f32
    %210 = vector.broadcast %cst_162 : f32 to vector<4x128xf32>
    %211 = arith.maximumf %209, %210 : vector<4x128xf32>
    %c0_163 = arith.constant 0 : index
    %c0_164 = arith.constant 0 : index
    %c0_165 = arith.constant 0 : index
    %212 = vector.load %arg11[%c0_163, %c0_164, %c0_165] : memref<1x4x128xf32, #tpu.memory_space<vmem>>, vector<1x4x128xf32>
    %213 = vector.shape_cast %212 : vector<1x4x128xf32> to vector<4x128xf32>
    %214 = vector.shape_cast %211 : vector<4x128xf32> to vector<1x4x128xf32>
    tpu.vector_store %arg11[%c0_163, %c0_164, %c0_165], %214 {strides = array<i32>} : memref<1x4x128xf32, #tpu.memory_space<vmem>>, vector<1x4x128xf32>,
    return
  }
  func.func @transform_0(%arg0: i32, %arg1: i32) -> (i32, i32) {
    %c0_i32 = arith.constant 0 : i32
    %c0_i32_0 = arith.constant 0 : i32
    %c0_i32_1 = arith.constant 0 : i32
    return %c0_i32, %c0_i32_0 : i32, i32
  }
  func.func @transform_1(%arg0: i32, %arg1: i32) -> (i32, i32, i32, i32) {
    %c0_i32 = arith.constant 0 : i32
    %c0_i32_0 = arith.constant 0 : i32
    %c0_i32_1 = arith.constant 0 : i32
    return %arg0, %arg1, %c0_i32, %c0_i32_0 : i32, i32, i32, i32
  }
  func.func @transform_2(%arg0: i32, %arg1: i32) -> (i32, i32, i32, i32) {
    %c0_i32 = arith.constant 0 : i32
    %c0_i32_0 = arith.constant 0 : i32
    %c0_i32_1 = arith.constant 0 : i32
    return %arg0, %arg1, %c0_i32, %c0_i32_0 : i32, i32, i32, i32
  }
  func.func @transform_3(%arg0: i32, %arg1: i32) -> (i32, i32) {
    %c0_i32 = arith.constant 0 : i32
    %c0_i32_0 = arith.constant 0 : i32
    %c0_i32_1 = arith.constant 0 : i32
    return %c0_i32, %c0_i32_0 : i32, i32
  }
  func.func @transform_4(%arg0: i32, %arg1: i32) -> (i32, i32) {
    %c0_i32 = arith.constant 0 : i32
    %c0_i32_0 = arith.constant 0 : i32
    %c0_i32_1 = arith.constant 0 : i32
    return %c0_i32, %c0_i32_0 : i32, i32
  }
  func.func @transform_5(%arg0: i32, %arg1: i32) -> (i32, i32) {
    %c0_i32 = arith.constant 0 : i32
    %c0_i32_0 = arith.constant 0 : i32
    %c0_i32_1 = arith.constant 0 : i32
    return %c0_i32, %c0_i32_0 : i32, i32
  }
  func.func @transform_6(%arg0: i32, %arg1: i32) -> (i32, i32) {
    %c0_i32 = arith.constant 0 : i32
    %c0_i32_0 = arith.constant 0 : i32
    %c0_i32_1 = arith.constant 0 : i32
    return %c0_i32, %c0_i32_0 : i32, i32
  }
  func.func @transform_7(%arg0: i32, %arg1: i32) -> (i32, i32) {
    %c0_i32 = arith.constant 0 : i32
    %c0_i32_0 = arith.constant 0 : i32
    %c0_i32_1 = arith.constant 0 : i32
    return %c0_i32, %c0_i32_0 : i32, i32
  }
  func.func @transform_8(%arg0: i32, %arg1: i32) -> (i32, i32) {
    %c0_i32 = arith.constant 0 : i32
    %c0_i32_0 = arith.constant 0 : i32
    %c0_i32_1 = arith.constant 0 : i32
    return %c0_i32, %c0_i32_0 : i32, i32
  }
  func.func @transform_9(%arg0: i32, %arg1: i32) -> (i32, i32, i32) {
    %c0_i32 = arith.constant 0 : i32
    %c0_i32_0 = arith.constant 0 : i32
    return %arg0, %c0_i32, %arg1 : i32, i32, i32
  }
}

</mosaic_0001>

<bundles_post_ra>
// kernel: tile.9
= control target key start
LH: loop header
LB: loop body
LE: loop exit
PB: predicated region body
PF: predicated region fallthrough
CT: control target
= control target key end

     0   :  { %s78_s10 = smov 112   ;;  %s79_s11 = smov 80   ;;  %vm4_vm0 = vcmask 130048   ;;  %vm10_vm1 = vcmask 1048448   ;;  %vm16_vm2 = vcmask 917248   ;;  %vm22_vm3 = vcmask 786048   ;;  %s125_s0 = inlined_call_operand.vmem [shape: s32[10,16], index: 0, kind: input, shape index: {}]   ;;  %s126_s1 = inlined_call_operand.vmem [shape: s32[1,160], index: 1, kind: output, shape index: {}]  }
   0x1   :  { %v63_v0 = vld [vmem:[%s125_s0 + $0x7] sm:$0x1]   ;;  %v65_v1 = vld [vmem:[%s125_s0 + $0x5] sm:$0x1]   ;;  %v64_v2 = vld [vmem:[%s125_s0 + $0x6] sm:$0x1]  }
   0x2   :  { %8 = vrot.lane.b32.xlu0 %v63_v0, %s78_s10  ;;  %20 = vrot.lane.b32.xlu1 %v65_v1, %s79_s11  ;;  %v66_v3 = vld [vmem:[%s125_s0 + $0x4] sm:$0x1]   ;;  %s2_s16 = smov 3  ;;  %s80_s17 = smov 96   ;;  %v67_v5 = vld [vmem:[%s125_s0 + $0x3] sm:$0x1]  }
   0x3   :  { %s81_s18 = smov 64   ;;  %v3_v4 = vld [vmem:[%s125_s0] ss:$8 sm:%s2_s16]   ;;  %v68_v6 = vld [vmem:[%s125_s0 + $0x2] sm:$0x1]   ;;  %s43_s25 = smov 3 }
   0x4   :  { %5 = vst.msk [vmem:[#allocation0] ss:$8 sm:$0x3] %vm4_vm0, %v3_v4   ;;  %s82_s26 = smov 48   ;;  %s83_s27 = smov 32   ;;  %vm28_vm4 = vcmask 654848  }
   0x5   :  { %v69_v7 = vld [vmem:[%s125_s0 + $0x1] ss:$8 sm:%s43_s25]   ;;  %s84_s0 = smov 16   ;;  %vm34_vm5 = vcmask 523648   ;;  %vm40_vm6 = vcmask 392448   ;;  %vm47_vm7 = vcmask 261248  }
   0x6   :  { %14 = vrot.lane.b32.xlu0 %v64_v2, %s80_s17  ;;  %26 = vrot.lane.b32.xlu1 %v66_v3, %s81_s18 }
   0xa   :  { %32 = vrot.lane.b32.xlu0 %v67_v5, %s82_s26  ;;  %38 = vrot.lane.b32.xlu1 %v68_v6, %s83_s27 }
   0xe   :  { %45 = vrot.lane.b32.xlu0 %v69_v7, %s84_s0 }
  0x74   :  { %v9_v8 = vpop.permute.xlu0 %8   ;;  %v21_v9 = vpop.permute.xlu1 %20  }
  0x75   :  { %11 = vst.msk [vmem:[#allocation0] sm:$0x1] %vm10_vm1, %v9_v8  }
  0x78   :  { %v15_v10 = vpop.permute.xlu0 %14   ;;  %v27_v11 = vpop.permute.xlu1 %26  }
  0x79   :  { %17 = vst.msk [vmem:[#allocation0] sm:$0x1] %vm16_vm2, %v15_v10  }
  0x7a   :  { %23 = vst.msk [vmem:[#allocation0] sm:$0x1] %vm22_vm3, %v21_v9  }
  0x7b   :  { %29 = vst.msk [vmem:[#allocation0] sm:$0x1] %vm28_vm4, %v27_v11  }
  0x7c   :  { %v33_v12 = vpop.permute.xlu0 %32   ;;  %v39_v13 = vpop.permute.xlu1 %38  }
  0x7d   :  { %35 = vst.msk [vmem:[#allocation0] sm:$0x1] %vm34_vm5, %v33_v12  }
  0x7e   :  { %41 = vst.msk [vmem:[#allocation0] sm:$0x1] %vm40_vm6, %v39_v13  }
  0x80   :  { %v46_v14 = vpop.permute.xlu0 %45  }
  0x81   :  { %48 = vst.msk [vmem:[#allocation0] ss:$8 sm:$0x3] %vm47_vm7, %v46_v14  }
  0x88   :  { %v53_v15 = vld [vmem:[#allocation0] sm:$0x1]  ;;  %v58_v16 = vld [vmem:[#allocation0 + $0x8] sm:$0x1] }
  0x89   :  { %56 = vst [vmem:[%s126_s1] sm:$0x1] %v53_v15  ;;  %70 = vst [vmem:[%s126_s1 + $0x1] sm:$0x1] %v58_v16 }

// kernel: up_forward.1
= control target key start
LH: loop header
LB: loop body
LE: loop exit
PB: predicated region body
PF: predicated region fallthrough
CT: control target
= control target key end

     0   :  { %s1354_s30 = smov 0   ;;  %s1356_s10 = smov 0   ;;  %s1617_s0 = inlined_call_operand.vmem [shape: s32[1,160], index: 0, kind: input, shape index: {}]   ;;  %s1618_s1 = inlined_call_operand.vmem [shape: f32[2,2,4,194], index: 1, kind: input, shape index: {}]   ;;  %s1619_s2 = inlined_call_operand.vmem [shape: f32[2,2,4,194], index: 2, kind: input, shape index: {}]   ;;  %s1620_s3 = inlined_call_operand.vmem [shape: f32[4,72], index: 3, kind: input, shape index: {}]   ;;  %s1621_s4 = inlined_call_operand.vmem [shape: f32[4,1], index: 4, kind: input, shape index: {}]   ;;  %s1622_s5 = inlined_call_operand.vmem [shape: f32[4,1], index: 5, kind: input, shape index: {}]   ;;  %s1623_s6 = inlined_call_operand.vmem [shape: f32[4,36], index: 6, kind: input, shape index: {}]   ;;  %s1624_s7 = inlined_call_operand.vmem [shape: f32[4,1], index: 7, kind: input, shape index: {}]   ;;  %s1625_s8 = inlined_call_operand.vmem [shape: f32[4,1], index: 8, kind: input, shape index: {}]   ;;  %s1626_s9 = inlined_call_operand.vmem [shape: f32[2,4,256], index: 9, kind: output, shape index: {}]  }
   0x1   :  { %s1358_s11 = smov 0   ;;  %s1360_s12 = smov 0  }
   0x2   :  { %s1362_s13 = smov 0  }
   0x3 LB: > { %s28_s14 = sadd.s32 1, %s1282_s11  ;;  %s31_s15 = sadd.s32 1, %s1286_s12  ;;  %s1290_s13 = sphi %s1362_s13, %s19_s13   ;;  %s1286_s12 = sphi %s1360_s12, %s1638_s12   ;;  %s1282_s11 = sphi %s1358_s11, %s1637_s11   ;;  %s1278_s10 = sphi %s1356_s10, %s1636_s10   ;;  %s1274_s30 = sphi %s1354_s30, %s1635_s30  }
   0x4   : > { %p29_p0 = scmp.ge.s32.totalorder %s28_s14, 2  ;;  %p1160_p1 = scmp.ge.s32.totalorder %s1290_s13, 1 }
   0x5   : > { %p323_p2 = scmp.lt.s32.totalorder %s1290_s13, 5 }
   0x6   : > { %s1640_s14 = smov (%p29_p0, %s28_s14), 0  ;;  %s1642_s15 = smov (!%p29_p0, %s31_s15), %s1286_s12 }
   0x7   : > { %p324_p3 = pnand %p1160_p1, %p323_p2  ;;  %p33_p4 = scmp.ge.s32.totalorder %s1642_s15, 2 }
   0x8   : > { %p375_p5 = scmp.lt.s32.totalorder (!%p324_p3), %s1278_s10, 1  ;;  %p377_p6 = scmp.lt.s32.totalorder (!%p324_p3), %s1274_s30, 1 }
   0x9   : > { %s1644_s15 = smov (%p33_p4, %s1642_s15), 0  ;;  %327 = sbr.rel (%p324_p3) target bundleno = 894 (0x37e), region = 56 }
   0xa   : > { %s1293_s29 = smov (!%p324_p3), 94   ;;  %s1294_s16 = smov (!%p324_p3), 96  }
   0xb   : > { %s1295_s17 = smov (!%p324_p3), 95   ;;  %s1300_s23 = smov (!%p324_p3), 127  }
   0xc   : > { %p815_p7 = scmp.gt.s32.totalorder (!%p324_p3), %s1274_s30, 0 }
   0xe   : > { %v401_v0 = vld [vmem:[%s1617_s0] sm:$0x3]  ;;  %v407_v1 = vlaneseq  ;;  %v1292_v2 = vmov 0   ;;  %s1646_s10 = smov (!%p375_p5, %s1278_s10), 1  ;;  %vm428_vm4 = vcmask 257024   ;;  %vm437_vm5 = vcmask 261124  }
   0xf   : > { %vm403_vm0 = vcmp.ne.s32.totalorder %v401_v0, 15  ;;  %vm402_vm1 = vcmp.ne.s32.totalorder %v401_v0, 0  ;;  %1245 = vset.pattern.permute.xlu0 %v1292_v2  ;;  %1246 = vset.pattern.permute.xlu1 %v1292_v2  ;;  %s1396_s18 = scalar_select %p377_p6, %s1274_s30, 1  ;;  %v1301_v23 = vmov 0.0   ;;  %v794_v24 = vld [vmem:[%s1621_s4] sm:$0xf] }
  0x10   : > { %v408_v3 = vshrl.u32 %v407_v1, 7  ;;  %v466_v4 = vsel %vm403_vm0, 1, %v1292_v2  ;;  %v406_v5 = vsel %vm402_vm1, 1, %v1292_v2  ;;  %s1162_s19 = sshll.u32 %s1646_s10, 2  ;;  %787 = vmatprep.mubr.f32.mxu0 %v1301_v23  ;;  %1180 = vmatprep.subr.mxu1 %v1301_v23  ;;  %v802_v25 = vld [vmem:[%s1622_s5] sm:$0xf] }
  0x11   : > { %s1161_s20 = sshll.u32 %s1396_s18, 1  ;;  %vm673_vm7 = vcmask 769024   ;;  %vm613_vm9 = vcmask 785408   ;;  %vm1630_vm10 = vcmask 777216   ;;  %vm578_vm11 = vcmask 900096   ;;  %s1302_s30 = smov 1  }
  0x12   : > { %v409_v6 = vsub.s32 0, %v408_v3  ;;  %v413_v7 = vsub.s32 1, %v408_v3  ;;  %s381_s21 = sadd.s32 %s1162_s19, %s1161_s20  ;;  %s1296_s19 = smov 110   ;;  %vm518_vm12 = vcmask 916480   ;;  %vm1629_vm13 = vcmask 908288  }
  0x13   : > { %s1163_s22 = sshll.u32 %s381_s21, 2  ;;  %s1297_s20 = smov 112   ;;  %vm1628_vm14 = vcmask 1031168   ;;  %vm1627_vm15 = vcmask 1039360   ;;  %vm719_vm0 = vcmask 588800  }
  0x14   : > { %v1400_v8 = vrot.slane %v466_v4, %v409_v6  ;;  %v1402_v9 = vrot.slane %v466_v4, %v413_v7  ;;  %v1404_v10 = vrot.slane %v406_v5, %v409_v6  ;;  %v1406_v11 = vrot.slane %v406_v5, %v413_v7  ;;  %s392_s25 = scalar_lea.vmem %s1619_s2, %s1163_s22  ;;  %s383_s28 = scalar_lea.vmem %s1618_s1, %s1163_s22 }
  0x15   : > { %v666_v12 = vld [vmem:[%s392_s25] sm:$0xff]  ;;  %s1298_s21 = smov 111   ;;  %s1299_s22 = smov 126  }
  0x16   : > { %v665_v13 = vld [vmem:[%s383_s28] sm:$0xff]  ;;  %vm415_vm2 = vcmp.eq.s32.totalorder %v1404_v10, 1  ;;  %681 = vrot.lane.b32.xlu0 %v666_v12, %s1293_s29  ;;  %v680_v14 = vcombine.high %v666_v12, %v666_v12  ;;  %vm416_vm3 = vcmp.eq.s32.totalorder %v1406_v11, 1  ;;  %v655_v22 = vcombine.low %v666_v12, %v666_v12  ;;  %s818_s25 = scalar_select %p815_p7, 1, 0 }
  0x17   : > { %669 = vrot.lane.b32.xlu1 %v665_v13, %s1293_s29  ;;  %v668_v15 = vcombine.high %v665_v13, %v665_v13  ;;  %v425_v16 = vsel %vm415_vm2, %v666_v12, 0.0  ;;  %v420_v18 = vsel %vm415_vm2, %v665_v13, 0.0  ;;  %vm476_vm6 = vcmp.eq.s32.totalorder %v1402_v9, 1  ;;  %s826_s26 = scalar_select %p377_p6, 1, 0 }
  0x18   : > { %v432_v17 = vrot.slane %v425_v16, 4  ;;  %v426_v19 = vsel %vm416_vm3, %v680_v14, 0.0  ;;  %427 = vst [vmem:[#allocation3] sm:$0xf] %v420_v18  ;;  %vm475_vm8 = vcmp.eq.s32.totalorder %v1400_v8, 1 }
  0x19   : > { %v421_v20 = vsel %vm416_vm3, %v668_v15, 0.0  ;;  %v433_v21 = vrot.slane %v426_v19, 4  ;;  %v946_v8 = vld [vmem:[%s1623_s6] sm:$0xf] }
  0x1a   : > { %436 = vst [vmem:[#allocation3] sm:$0xf0] %v432_v17  ;;  %429 = vst.msk [vmem:[#allocation3 + $0x8] sm:$0xf] %vm428_vm4, %v421_v20  ;;  %621 = vrot.lane.b32.xlu0 %v666_v12, %s1294_s16 }
  0x1b   : > { %671 = vrot.lane.b32.xlu1 %v668_v15, %s1293_s29  ;;  %438 = vst.msk [vmem:[#allocation3 + $0x8] sm:$0xf0] %vm437_vm5, %v433_v21 }
  0x1e   : > { %683 = vrot.lane.b32.xlu0 %v680_v14, %s1293_s29 }
  0x1f   : > { %623 = vrot.lane.b32.xlu1 %v680_v14, %s1294_s16 }
  0x22   : > { %644 = vrot.lane.b32.xlu0 %v665_v13, %s1295_s17 }
  0x23   : > { %646 = vrot.lane.b32.xlu1 %v668_v15, %s1295_s17 }
  0x26   : > { %656 = vrot.lane.b32.xlu0 %v655_v22, %s1295_s17 }
  0x27   : > { %658 = vrot.lane.b32.xlu1 %v666_v12, %s1295_s17 }
  0x2a   : > { %586 = vrot.lane.b32.xlu0 %v666_v12, %s1296_s19 }
  0x2b   : > { %588 = vrot.lane.b32.xlu1 %v680_v14, %s1296_s19 }
  0x2e   : > { %609 = vrot.lane.b32.xlu0 %v665_v13, %s1294_s16 }
  0x2f   : > { %611 = vrot.lane.b32.xlu1 %v668_v15, %s1294_s16 }
  0x32   : > { %574 = vrot.lane.b32.xlu0 %v665_v13, %s1296_s19 }
  0x33   : > { %576 = vrot.lane.b32.xlu1 %v668_v15, %s1296_s19 }
  0x36   : > { %526 = vrot.lane.b32.xlu0 %v666_v12, %s1297_s20 }
  0x37   : > { %528 = vrot.lane.b32.xlu1 %v680_v14, %s1297_s20 }
  0x3a   : > { %549 = vrot.lane.b32.xlu0 %v665_v13, %s1298_s21 }
  0x3b   : > { %551 = vrot.lane.b32.xlu1 %v668_v15, %s1298_s21 }
  0x3e   : > { %561 = vrot.lane.b32.xlu0 %v655_v22, %s1298_s21 }
  0x3f   : > { %563 = vrot.lane.b32.xlu1 %v666_v12, %s1298_s21 }
  0x42   : > { %491 = vrot.lane.b32.xlu0 %v666_v12, %s1299_s22 }
  0x43   : > { %493 = vrot.lane.b32.xlu1 %v680_v14, %s1299_s22 }
  0x46   : > { %514 = vrot.lane.b32.xlu0 %v665_v13, %s1297_s20 }
  0x47   : > { %516 = vrot.lane.b32.xlu1 %v668_v15, %s1297_s20 }
  0x4a   : > { %479 = vrot.lane.b32.xlu0 %v665_v13, %s1299_s22 }
  0x4b   : > { %481 = vrot.lane.b32.xlu1 %v668_v15, %s1299_s22 }
  0x4e   : > { %443 = vrot.lane.b32.xlu0 %v665_v13, %s1300_s23 }
  0x4f   : > { %445 = vrot.lane.b32.xlu1 %v668_v15, %s1300_s23 }
  0x52   : > { %455 = vrot.lane.b32.xlu0 %v655_v22, %s1300_s23 }
  0x53   : > { %457 = vrot.lane.b32.xlu1 %v666_v12, %s1300_s23 }
  0x56   : > { %797 = vperm.xlu0 %1245, %v794_v24  }
  0x57   : > { %805 = vperm.xlu1 %1246, %v802_v25  }
  0x88   : > { %v682_v26 = vpop.permute.xlu0 %681 }
  0x89   : > { %v670_v27 = vpop.permute.xlu1 %669 }
  0x8c   : > { %v622_v28 = vpop.permute.xlu0 %621 }
  0x8d   : > { %v672_v29 = vpop.permute.xlu1 %671 }
  0x8e   : > { %v674_v30 = vsel %vm673_vm7, %v670_v27, %v672_v29  ;;  %v678_v31 = vsel %vm476_vm6, %v672_v29, 0.0 }
  0x8f   : > { %v677_v32 = vsel %vm475_vm8, %v674_v30, 0.0  ;;  %691 = vst.msk [vmem:[#allocation3 + $0x88] sm:$0xf] %vm428_vm4, %v678_v31 }
  0x90   : > { %690 = vst [vmem:[#allocation3 + $0x80] sm:$0xf] %v677_v32  ;;  %v684_v33 = vpop.permute.xlu0 %683 }
  0x91   : > { %v624_v34 = vpop.permute.xlu1 %623  ;;  %v685_v35 = vsel %vm673_vm7, %v682_v26, %v684_v33  ;;  %v689_v36 = vsel %vm476_vm6, %v684_v33, 0.0 }
  0x92   : > { %v625_v37 = vsel %vm613_vm9, %v622_v28, %v624_v34  ;;  %v629_v38 = vsel %vm416_vm3, %v624_v34, 0.0  ;;  %v688_v39 = vsel %vm475_vm8, %v685_v35, 0.0  ;;  %v695_v40 = vrot.slane %v689_v36, 4 }
  0x93   : > { %v628_v41 = vsel %vm415_vm2, %v625_v37, 0.0  ;;  %v635_v42 = vrot.slane %v629_v38, 4  ;;  %v694_v43 = vrot.slane %v688_v39, 4 }
  0x94   : > { %v634_v44 = vrot.slane %v628_v41, 4  ;;  %699 = vst.msk [vmem:[#allocation3 + $0x88] sm:$0xf0] %vm437_vm5, %v695_v40  ;;  %v645_v45 = vpop.permute.xlu0 %644 }
  0x95   : > { %639 = vst.msk [vmem:[#allocation3 + $0x68] sm:$0xf0] %vm437_vm5, %v635_v42  ;;  %v647_v46 = vpop.permute.xlu1 %646  ;;  %698 = vst [vmem:[#allocation3 + $0x80] sm:$0xf0] %v694_v43 }
  0x96   : > { %638 = vst [vmem:[#allocation3 + $0x60] sm:$0xf0] %v634_v44  ;;  %v649_v47 = vsel %vm1630_vm10, %v645_v45, %v647_v46  ;;  %653 = vst.msk [vmem:[#allocation3 + $0x78] sm:$0xf] %vm428_vm4, %v647_v46 }
  0x97   : > { %652 = vst [vmem:[#allocation3 + $0x70] sm:$0xf] %v649_v47 }
  0x98   : > { %v657_v48 = vpop.permute.xlu0 %656 }
  0x99   : > { %v659_v49 = vpop.permute.xlu1 %658 }
  0x9a   : > { %v660_v50 = vsel %vm1630_vm10, %v657_v48, %v659_v49  ;;  %664 = vst.msk [vmem:[#allocation3 + $0x78] sm:$0xf0] %vm437_vm5, %v659_v49 }
  0x9b   : > { %663 = vst [vmem:[#allocation3 + $0x70] sm:$0xf0] %v660_v50  ;;  %v718_v51 = vld [vmem:[#allocation3 + $0x88] sm:$0xff] }
  0x9c   : > { %737 = vmatprep.subr.mxu0 %v718_v51  ;;  %v587_v52 = vpop.permute.xlu0 %586  ;;  %v717_v54 = vld [vmem:[#allocation3 + $0x80] sm:$0xff] }
  0x9d   : > { %v589_v53 = vpop.permute.xlu1 %588  ;;  %738 = vmatpush1.msra.mxu0 %v717_v54 }
  0x9e   : > { %v590_v55 = vsel %vm578_vm11, %v587_v52, %v589_v53  ;;  %v594_v56 = vsel %vm476_vm6, %v589_v53, 0.0 }
  0x9f   : > { %v593_v57 = vsel %vm475_vm8, %v590_v55, 0.0  ;;  %v600_v58 = vrot.slane %v594_v56, 4 }
  0xa0   : > { %v599_v59 = vrot.slane %v593_v57, 4  ;;  %v610_v60 = vpop.permute.xlu0 %609 }
  0xa1   : > { %604 = vst.msk [vmem:[#allocation3 + $0x58] sm:$0xf0] %vm437_vm5, %v600_v58  ;;  %v612_v61 = vpop.permute.xlu1 %611  ;;  %v716_v62 = vld [vmem:[#allocation3 + $0x78] sm:$0xff] }
  0xa2   : > { %603 = vst [vmem:[#allocation3 + $0x50] sm:$0xf0] %v599_v59  ;;  %v614_v63 = vsel %vm613_vm9, %v610_v60, %v612_v61  ;;  %v618_v0 = vsel %vm416_vm3, %v612_v61, 0.0  ;;  %739 = vmatprep.subr.mxu0 %v716_v62  ;;  %v715_v2 = vld [vmem:[#allocation3 + $0x70] sm:$0xff]  ;;  %v702_v59 = vld [vmem:[#allocation3 + $0x8] sm:$0xff]  ;;  %v701_v61 = vld [vmem:[#allocation3] sm:$0xff] }
  0xa3   : > { %v617_v3 = vsel %vm415_vm2, %v614_v63, 0.0  ;;  %631 = vst.msk [vmem:[#allocation3 + $0x68] sm:$0xf] %vm428_vm4, %v618_v0  ;;  %740 = vmatpush1.msra.mxu0 %v715_v2  ;;  %v700_v62 = vld [vmem:[%s1620_s3] sm:$0xf]  ;;  %v813_v63 = vand.u32 127, %v407_v1  ;;  %v819_v2 = vstv %s818_s25 }
  0xa4   : > { %630 = vst [vmem:[#allocation3 + $0x60] sm:$0xf] %v617_v3  ;;  %v575_v4 = vpop.permute.xlu0 %574 }
  0xa5   : > { %v577_v5 = vpop.permute.xlu1 %576  ;;  %v814_v3 = vadd.s32 128, %v813_v63  ;;  %vm816_vm1 = vcmp.ge.s32.totalorder %v813_v63, 16 }
  0xa6   : > { %v579_v6 = vsel %vm578_vm11, %v575_v4, %v577_v5  ;;  %v583_v7 = vsel %vm476_vm6, %v577_v5, 0.0 }
  0xa7   : > { %v582_v12 = vsel %vm475_vm8, %v579_v6, 0.0  ;;  %596 = vst.msk [vmem:[#allocation3 + $0x58] sm:$0xf] %vm428_vm4, %v583_v7  ;;  %v827_v6 = vstv %s826_s26 }
  0xa8   : > { %595 = vst [vmem:[#allocation3 + $0x50] sm:$0xf] %v582_v12  ;;  %v527_v13 = vpop.permute.xlu0 %526 }
  0xa9   : > { %v529_v14 = vpop.permute.xlu1 %528 }
  0xaa   : > { %v530_v15 = vsel %vm518_vm12, %v527_v13, %v529_v14  ;;  %v534_v16 = vsel %vm416_vm3, %v529_v14, 0.0  ;;  %v714_v17 = vld [vmem:[#allocation3 + $0x68] sm:$0xff] }
  0xab   : > { %v533_v18 = vsel %vm415_vm2, %v530_v15, 0.0  ;;  %v540_v19 = vrot.slane %v534_v16, 4  ;;  %741 = vmatprep.subr.mxu0 %v714_v17  ;;  %v713_v20 = vld [vmem:[#allocation3 + $0x60] sm:$0xff] }
  0xac   : > { %v539_v21 = vrot.slane %v533_v18, 4  ;;  %742 = vmatpush1.msra.mxu0 %v713_v20  ;;  %v550_v22 = vpop.permute.xlu0 %549 }
  0xad   : > { %544 = vst.msk [vmem:[#allocation3 + $0x38] sm:$0xf0] %vm437_vm5, %v540_v19  ;;  %v552_v24 = vpop.permute.xlu1 %551 }
  0xae   : > { %543 = vst [vmem:[#allocation3 + $0x30] sm:$0xf0] %v539_v21  ;;  %v554_v25 = vsel %vm1629_vm13, %v550_v22, %v552_v24  ;;  %558 = vst.msk [vmem:[#allocation3 + $0x48] sm:$0xf] %vm428_vm4, %v552_v24  ;;  %v712_v26 = vld [vmem:[#allocation3 + $0x58] sm:$0xff] }
  0xaf   : > { %557 = vst [vmem:[#allocation3 + $0x40] sm:$0xf] %v554_v25  ;;  %743 = vmatprep.subr.mxu0 %v712_v26  ;;  %v711_v27 = vld [vmem:[#allocation3 + $0x50] sm:$0xff] }
  0xb0   : > { %744 = vmatpush1.msra.mxu0 %v711_v27  ;;  %v562_v28 = vpop.permute.xlu0 %561 }
  0xb1   : > { %v564_v29 = vpop.permute.xlu1 %563 }
  0xb2   : > { %v565_v30 = vsel %vm1629_vm13, %v562_v28, %v564_v29  ;;  %569 = vst.msk [vmem:[#allocation3 + $0x48] sm:$0xf0] %vm437_vm5, %v564_v29  ;;  %vm845_vm13 = vcmask 7168   ;;  %v1037_v29 = vld [vmem:[%s1625_s8] sm:$0xf] }
  0xb3   : > { %568 = vst [vmem:[#allocation3 + $0x40] sm:$0xf0] %v565_v30  ;;  %v1030_v30 = vld [vmem:[%s1624_s7] sm:$0xf] }
  0xb4   : > { %v492_v31 = vpop.permute.xlu0 %491 }
  0xb5   : > { %v494_v32 = vpop.permute.xlu1 %493 }
  0xb6   : > { %v495_v33 = vsel %vm1628_vm14, %v492_v31, %v494_v32  ;;  %v499_v34 = vsel %vm476_vm6, %v494_v32, 0.0 }
  0xb7   : > { %v498_v35 = vsel %vm475_vm8, %v495_v33, 0.0  ;;  %v505_v36 = vrot.slane %v499_v34, 4 }
  0xb8   : > { %v504_v37 = vrot.slane %v498_v35, 4  ;;  %v515_v38 = vpop.permute.xlu0 %514 }
  0xb9   : > { %509 = vst.msk [vmem:[#allocation3 + $0x28] sm:$0xf0] %vm437_vm5, %v505_v36  ;;  %v517_v39 = vpop.permute.xlu1 %516  ;;  %v710_v40 = vld [vmem:[#allocation3 + $0x48] sm:$0xff] }
  0xba   : > { %508 = vst [vmem:[#allocation3 + $0x20] sm:$0xf0] %v504_v37  ;;  %v519_v41 = vsel %vm518_vm12, %v515_v38, %v517_v39  ;;  %v523_v42 = vsel %vm416_vm3, %v517_v39, 0.0  ;;  %745 = vmatprep.subr.mxu0 %v710_v40  ;;  %v709_v43 = vld [vmem:[#allocation3 + $0x40] sm:$0xff]  ;;  %vm820_vm3 = vcmp.eq.s32.totalorder %v819_v2, 1 }
  0xbb   : > { %v522_v44 = vsel %vm415_vm2, %v519_v41, 0.0  ;;  %536 = vst.msk [vmem:[#allocation3 + $0x38] sm:$0xf] %vm428_vm4, %v523_v42  ;;  %746 = vmatpush1.msra.mxu0 %v709_v43 }
  0xbc   : > { %535 = vst [vmem:[#allocation3 + $0x30] sm:$0xf] %v522_v44  ;;  %v480_v45 = vpop.permute.xlu0 %479 }
  0xbd   : > { %v482_v46 = vpop.permute.xlu1 %481 }
  0xbe   : > { %v484_v47 = vsel %vm1628_vm14, %v480_v45, %v482_v46  ;;  %v488_v48 = vsel %vm476_vm6, %v482_v46, 0.0  ;;  %vm821_vm6 = vmor %vm820_vm3, %vm816_vm1  ;;  %vm849_vm14 = vcmask 269316  }
  0xbf   : > { %v487_v11 = vsel %vm475_vm8, %v484_v47, 0.0  ;;  %501 = vst.msk [vmem:[#allocation3 + $0x28] sm:$0xf] %vm428_vm4, %v488_v48 }
  0xc0   : > { %500 = vst [vmem:[#allocation3 + $0x20] sm:$0xf] %v487_v11  ;;  %v444_v49 = vpop.permute.xlu0 %443 }
  0xc1   : > { %v446_v50 = vpop.permute.xlu1 %445 }
  0xc2   : > { %v448_v51 = vsel %vm1627_vm15, %v444_v49, %v446_v50  ;;  %452 = vst.msk [vmem:[#allocation3 + $0x18] sm:$0xf] %vm428_vm4, %v446_v50  ;;  %v708_v52 = vld [vmem:[#allocation3 + $0x38] sm:$0xff]  ;;  %vm825_vm4 = vcmp.lt.s32.totalorder %v814_v3, 144 }
  0xc3   : > { %451 = vst [vmem:[#allocation3 + $0x10] sm:$0xf] %v448_v51  ;;  %747 = vmatprep.subr.mxu0 %v708_v52  ;;  %v707_v53 = vld [vmem:[#allocation3 + $0x30] sm:$0xff] }
  0xc4   : > { %748 = vmatpush1.msra.mxu0 %v707_v53  ;;  %v456_v9 = vpop.permute.xlu0 %455 }
  0xc5   : > { %v458_v54 = vpop.permute.xlu1 %457 }
  0xc6   : > { %v459_v55 = vsel %vm1627_vm15, %v456_v9, %v458_v54  ;;  %463 = vst.msk [vmem:[#allocation3 + $0x18] sm:$0xf0] %vm437_vm5, %v458_v54  ;;  %v706_v56 = vld [vmem:[#allocation3 + $0x28] sm:$0xff]  ;;  %vm828_vm5 = vcmp.eq.s32.totalorder %v827_v6, 1  ;;  %vm848_vm15 = vcmask 1043464  }
  0xc7   : > { %462 = vst [vmem:[#allocation3 + $0x10] sm:$0xf0] %v459_v55  ;;  %749 = vmatprep.subr.mxu0 %v706_v56  ;;  %v705_v57 = vld [vmem:[#allocation3 + $0x20] sm:$0xff]  ;;  %vm850_vm10 = vmor %vm849_vm14, %vm848_vm15 }
  0xc8   : > { %750 = vmatpush1.msra.mxu0 %v705_v57 }
  0xcd   : > { %v704_v58 = vld [vmem:[#allocation3 + $0x18] sm:$0xff] }
  0xce   : > { %751 = vmatprep.subr.mxu0 %v704_v58  ;;  %v703_v60 = vld [vmem:[#allocation3 + $0x10] sm:$0xff] }
  0xcf   : > { %752 = vmatpush1.msra.mxu0 %v703_v60 }
  0xd0   : > { %753 = vmatprep.subr.mxu0 %v702_v59 }
  0xd1   : > { %754 = vmatpush1.msra.mxu0 %v701_v61  ;;  %v798_v0 = vpop.permute.xlu0 %797 }
  0xd2   : > { %1169 = vmatmul.mubr.msk.f32.vlgmr.msra.gmra.mxu0 %vm719_vm0, %v700_v62  ;;  %v806_v5 = vpop.permute.xlu1 %805  ;;  %vm830_vm0 = vmor %vm828_vm5, %vm825_vm4 }
 0x192   : > { %v789_v4 = vpop.f32.mrf.mxu0 }
 0x193   : > { %v800_v7 = vmul.f32 %v798_v0, %v789_v4 }
 0x194   : > { %v791_v12 = vpop.f32.mrf.mxu0 }
 0x195   : > { %v808_v13 = vadd.f32 %v806_v5, %v800_v7  ;;  %v801_v14 = vmul.f32 %v798_v0, %v791_v12 }
 0x197   : > { %v810_v15 = vmax.f32 %v808_v13, 0.0  ;;  %v809_v1 = vadd.f32 %v806_v5, %v801_v14 }
 0x199   : > { %v811_v16 = vmax.f32 %v809_v1, 0.0  ;;  %v837_v17 = vsel %vm821_vm6, %v810_v15, 0.0 }
 0x19b   : > { %v838_v18 = vsel %vm830_vm0, %v811_v16, 0.0 }
 0x19c   : > { %v841_v19 = vcombine.low %v837_v17, %v838_v18 }
 0x19e   : > { %842 = vrot.lane.b32.xlu1 %v841_v19, %s1302_s30 }
 0x210   : > { %v843_v20 = vpop.permute.xlu1 %842 }
 0x211   : > { %v844_v21 = vrot.slane %v843_v20, 4 }
 0x213   : > { %v846_v22 = vsel %vm845_vm13, %v844_v21, %v843_v20  ;;  %vm956_vm13 = vcmask 1043456  }
 0x214   : > { %851 = vst.msk [vmem:[#allocation2] sm:$0xff] %vm850_vm10, %v846_v22  ;;  %vm1303_vm10 = vmmov 0  }
 0x215   : > { %1190 = vmatprep.mubr.msk.f32.mxu1 %vm1303_vm10, %v1301_v23 }
 0x21b   : > { %v852_v24 = vld [vmem:[#allocation2] sm:$0xf] }
 0x21c   : > { %v935_v25 = vld [vmem:[#allocation2] sm:$0xff]  ;;  %v853_v26 = vsel %vm415_vm2, %v852_v24, 0.0 }
 0x21d   : > { %938 = vrot.lane.b32.xlu0 %v935_v25, %s1293_s29  ;;  %930 = vrot.lane.b32.xlu1 %v935_v25, %s1295_s17  ;;  %854 = vst [vmem:[#allocation3] sm:$0xf] %v853_v26  ;;  %v937_v27 = vcombine.high %v935_v25, %v935_v25  ;;  %v927_v28 = vcombine.low %v935_v25, %v935_v25 }
 0x221   : > { %940 = vrot.lane.b32.xlu1 %v937_v27, %s1293_s29  ;;  %903 = vrot.lane.b32.xlu0 %v935_v25, %s1296_s19 }
 0x225   : > { %917 = vrot.lane.b32.xlu0 %v935_v25, %s1294_s16  ;;  %905 = vrot.lane.b32.xlu1 %v937_v27, %s1296_s19 }
 0x229   : > { %919 = vrot.lane.b32.xlu1 %v937_v27, %s1294_s16  ;;  %879 = vrot.lane.b32.xlu0 %v935_v25, %s1297_s20 }
 0x22d   : > { %893 = vrot.lane.b32.xlu0 %v935_v25, %s1298_s21  ;;  %881 = vrot.lane.b32.xlu1 %v937_v27, %s1297_s20 }
 0x231   : > { %928 = vrot.lane.b32.xlu0 %v927_v28, %s1295_s17  ;;  %895 = vrot.lane.b32.xlu1 %v937_v27, %s1298_s21 }
 0x235   : > { %868 = vrot.lane.b32.xlu0 %v935_v25, %s1299_s22  ;;  %870 = vrot.lane.b32.xlu1 %v937_v27, %s1299_s22  ;;  %s1167_s22 = sshll.u32 %s1646_s10, 1 }
 0x239   : > { %860 = vrot.lane.b32.xlu1 %v935_v25, %s1300_s23  ;;  %858 = vrot.lane.b32.xlu0 %v927_v28, %s1300_s23  ;;  %s398_s23 = sadd.s32 %s1167_s22, %s1396_s18 }
 0x23a   : > { %s1168_s27 = sshll.u32 %s398_s23, 2 }
 0x23b   : > { %s400_s25 = scalar_lea.vmem %s1626_s9, %s1168_s27 }
 0x23d   : > { %1040 = vperm.xlu1 %1246, %v1037_v29   ;;  %1033 = vperm.xlu0 %1245, %v1030_v30  }
 0x28f   : > { %v939_v31 = vpop.permute.xlu0 %938  ;;  %v931_v32 = vpop.permute.xlu1 %930 }
 0x293   : > { %v941_v33 = vpop.permute.xlu1 %940  ;;  %v904_v34 = vpop.permute.xlu0 %903 }
 0x294   : > { %v942_v35 = vsel %vm673_vm7, %v939_v31, %v941_v33  ;;  %vm1631_vm7 = vcmask 777216  }
 0x295   : > { %v944_v36 = vsel %vm475_vm8, %v942_v35, 0.0 }
 0x296   : > { %945 = vst [vmem:[#allocation3 + $0x40] sm:$0xf] %v944_v36 }
 0x297   : > { %v918_v37 = vpop.permute.xlu0 %917  ;;  %v906_v38 = vpop.permute.xlu1 %905 }
 0x298   : > { %v907_v39 = vsel %vm578_vm11, %v904_v34, %v906_v38  ;;  %vm1633_vm11 = vcmask 1031168  }
 0x299   : > { %v909_v40 = vsel %vm475_vm8, %v907_v39, 0.0 }
 0x29a   : > { %v911_v41 = vrot.slane %v909_v40, 4 }
 0x29b   : > { %v920_v42 = vpop.permute.xlu1 %919  ;;  %v880_v43 = vpop.permute.xlu0 %879 }
 0x29c   : > { %913 = vst [vmem:[#allocation3 + $0x20] sm:$0xf0] %v911_v41  ;;  %v921_v44 = vsel %vm613_vm9, %v918_v37, %v920_v42  ;;  %vm1632_vm9 = vcmask 908288  }
 0x29d   : > { %v923_v45 = vsel %vm415_vm2, %v921_v44, 0.0  ;;  %v951_v46 = vld [vmem:[#allocation3 + $0x40] sm:$0xf] }
 0x29e   : > { %924 = vst [vmem:[#allocation3 + $0x30] sm:$0xf] %v923_v45  ;;  %1181 = vmatpush3.msk.msra.mxu1 %vm956_vm13, %v951_v46 }
 0x29f   : > { %v894_v47 = vpop.permute.xlu0 %893  ;;  %v882_v48 = vpop.permute.xlu1 %881  ;;  %1182 = vmatprep.subr.mxu1 %v1301_v23 }
 0x2a0   : > { %v883_v11 = vsel %vm518_vm12, %v880_v43, %v882_v48 }
 0x2a1   : > { %v885_v49 = vsel %vm415_vm2, %v883_v11, 0.0  ;;  %vm1634_vm2 = vcmask 1039360  }
 0x2a2   : > { %v887_v50 = vrot.slane %v885_v49, 4 }
 0x2a3   : > { %v929_v51 = vpop.permute.xlu0 %928  ;;  %v896_v52 = vpop.permute.xlu1 %895 }
 0x2a4   : > { %889 = vst [vmem:[#allocation3 + $0x10] sm:$0xf0] %v887_v50  ;;  %v932_v53 = vsel %vm1631_vm7, %v929_v51, %v931_v32  ;;  %v897_v9 = vsel %vm1632_vm9, %v894_v47, %v896_v52 }
 0x2a5   : > { %934 = vst [vmem:[#allocation3 + $0x30] sm:$0xf0] %v932_v53  ;;  %899 = vst [vmem:[#allocation3 + $0x20] sm:$0xf] %v897_v9 }
 0x2a7   : > { %v869_v54 = vpop.permute.xlu0 %868  ;;  %v871_v55 = vpop.permute.xlu1 %870 }
 0x2a8   : > { %v872_v56 = vsel %vm1633_vm11, %v869_v54, %v871_v55 }
 0x2a9   : > { %v874_v57 = vsel %vm475_vm8, %v872_v56, 0.0  ;;  %vm952_vm8 = vcmask 293888  }
 0x2aa   : > { %875 = vst [vmem:[#allocation3 + $0x10] sm:$0xf] %v874_v57 }
 0x2ab   : > { %v861_v10 = vpop.permute.xlu1 %860  ;;  %v859_v58 = vpop.permute.xlu0 %858 }
 0x2ac   : > { %v862_v59 = vsel %vm1634_vm2, %v859_v58, %v861_v10  ;;  %v950_v60 = vld [vmem:[#allocation3 + $0x30] sm:$0xff]  ;;  %v949_v61 = vld [vmem:[#allocation3 + $0x20] sm:$0xff] }
 0x2ad   : > { %864 = vst [vmem:[#allocation3] sm:$0xf0] %v862_v59  ;;  %1183 = vmatpush3.msra.mxu1 %v950_v60 }
 0x2ae   : > { %1184 = vmatprep.subr.mxu1 %v1301_v23 }
 0x2af   : > { %1185 = vmatpush3.msra.mxu1 %v949_v61 }
 0x2b0   : > { %1186 = vmatprep.subr.mxu1 %v1301_v23 }
 0x2b1   : > { %v948_v62 = vld [vmem:[#allocation3 + $0x10] sm:$0xff] }
 0x2b2   : > { %1187 = vmatpush3.msra.mxu1 %v948_v62 }
 0x2b3   : > { %1188 = vmatprep.subr.mxu1 %v1301_v23 }
 0x2b4   : > { %v947_v63 = vld [vmem:[#allocation3] sm:$0xff] }
 0x2b5   : > { %1189 = vmatpush3.msra.mxu1 %v947_v63 }
 0x2b6   : > { %1191 = vmatmul.mubr.msk.f32.vlgmr.msra.gmra.mxu1 %vm952_vm8, %v946_v8 }
 0x2b8   : > { %v1034_v0 = vpop.permute.xlu0 %1033  ;;  %v1041_v4 = vpop.permute.xlu1 %1040 }
 0x376   : > { %v1026_v2 = vpop.f32.mrf.mxu1 }
 0x377   : > { %v1036_v3 = vmul.f32 %v1034_v0, %v1026_v2 }
 0x378   : > { %v1192_v5 = vpop.f32.mrf.mxu1 }
 0x379   : > { %v1043_v6 = vadd.f32 %v1041_v4, %v1036_v3 }
 0x37b   : > { %v1044_v23 = vmax.f32 %v1043_v6, 0.0 }
 0x37d   : > { %1045 = vst [vmem:[%s400_s25] sm:$0xf] %v1044_v23 }
 0x37e PF: > { %s19_s13 = sadd.s32 1, %s1290_s13   ;;  %s1635_s30 = smov %s1282_s11 }
 0x37f   : > { %p16_p8 = scmp.ge.s32.totalorder %s19_s13, 6   ;;  %s1636_s10 = smov %s1286_s12 }
 0x380   : > { %s1637_s11 = smov %s1640_s14  ;;  %s1638_s12 = smov %s1644_s15 }
 0x381   :  { %18 = sbr.rel (!%p16_p8) target bundleno = 3 (0x3), region = 89 }

</bundles_post_ra>
